<compile_context>
chip_gen: v5e
topology: v5e:2x2
jax: 0.10.0
libtpu: 0.0.40
codegen_flags: <defaults>
</compile_context>

<pallas_src>
import functools
import math

import jax
import jax.numpy as jnp
from jax.experimental import pallas as pl
from jax.experimental.pallas import tpu as pltpu


def _gpt_forward_kernel(idx_ref, pos_ref, wte_ref, wfc_ref, bfc_ref, wproj_ref,
                        bproj_ref, bhead_ref, tgt_ref, logits_ref, loss_ref,
                        *, hidden_chunk, bf16_elementwise, compute_dtype):
    """One row tile (TM rows on the lane axis) of the fused GPTBase forward."""
    E, TM = pos_ref.shape
    F = wfc_ref.shape[0]
    n_chunks = F // hidden_chunk

    wte = wte_ref[...]                                    # (E, 1)   f32
    idx_row = idx_ref[0]                                  # (1, TM)  f32

    # token embedding (Linear(1, E, bias=False)) + positional embedding,
    # transposed: features on sublanes, rows on lanes.
    x0 = wte * idx_row + pos_ref[...]                     # (E, TM)  f32
    x0c = x0.astype(compute_dtype)

    # MLP: c_fc -> ReLU -> c_proj.  Hidden dim processed in static chunks so the
    # largest temporary is (hidden_chunk, TM); f32 accumulation on the MXU.
    y = None
    for c in range(n_chunks):
        lo = c * hidden_chunk
        hi = lo + hidden_chunk
        acc = jnp.dot(wfc_ref[lo:hi, :], x0c,
                      preferred_element_type=jnp.float32)              # (FC, TM)
        if bf16_elementwise:
            # bf16 VALU (v6e/v7x): cast the accumulator once, bias+relu in bf16.
            h = jnp.maximum(acc.astype(jnp.bfloat16)
                            + bfc_ref[lo:hi, :].astype(jnp.bfloat16), 0)
        else:
            h = jnp.maximum(acc + bfc_ref[lo:hi, :], 0.0).astype(compute_dtype)
        contrib = jnp.dot(wproj_ref[:, lo:hi], h,
                          preferred_element_type=jnp.float32)           # (E, TM)
        y = contrib if y is None else y + contrib
    y = y + bproj_ref[...]                                # (E, TM)  f32

    # residual (dropout p=0 -> identity)
    x = x0 + y                                            # (E, TM)  f32

    # tied lm head: z[m] = sum_e x[e, m] * wte[e] + b.  VPU multiply + sublane
    # reduction; result is already lane-dense (1, TM) -> no transpose, no 1-row
    # MXU pass.
    z = jnp.sum(x * wte, axis=0, keepdims=True) + bhead_ref[0, 0]       # (1, TM)
    logits_ref[...] = z.reshape(1, 1, TM)

    # BCE-with-logits per-tile partial sum (the mean is finished in the wrapper
    # so the grid axis stays parallel-safe).  Numerically stable softplus form.
    tgt = tgt_ref[0]                                      # (1, TM)  f32
    softplus = lambda v: jnp.maximum(v, 0.0) + jnp.log1p(jnp.exp(-jnp.abs(v)))
    per = tgt * softplus(-z) + (1.0 - tgt) * softplus(z)  # (1, TM)
    psum = jnp.sum(per, axis=-1, keepdims=True)           # (1, 1)
    loss_ref[...] = (psum * jnp.ones((1, 128), jnp.float32)).reshape(1, 1, 128)


def _device_kind():
    try:
        return jax.devices()[0].device_kind.lower()
    except Exception:
        return ""


def _physical_vmem_bytes(kind):
    try:
        cap = getattr(pltpu.get_tpu_info(), "vmem_capacity_bytes", None)
        if cap:
            return int(cap)
    except Exception:
        pass
    return (64 << 20) if "v7" in kind else (128 << 20)


def _round_up(x, m):
    return (x + m - 1) // m * m


def _padded_bytes(shape, dtype):
    """(8,128)-tile-padded VMEM footprint of a single buffer of `shape`."""
    item = jnp.dtype(dtype).itemsize
    shape = (1,) * max(0, 2 - len(shape)) + tuple(int(d) for d in shape)
    sub_mult = max(8, 32 // item)                 # 8 rows f32, 16 rows bf16
    lane = _round_up(shape[-1], 128)
    sub = _round_up(shape[-2], sub_mult)
    lead = 1
    for d in shape[:-2]:
        lead *= d
    return lead * sub * lane * item


def _candidate_seqs(b, t):
    """Sequences-per-tile candidates, best lane-divisibility class first."""
    divisors = [s for s in range(1, b + 1) if b % s == 0]
    for mod in (128, 16, 8):
        xs = [s for s in divisors if (s * t) % mod == 0]
        if xs:
            return xs
    return [b]                                    # fallback: single tile == full array


def _pick_hidden_chunk(F, max_chunk=2048):
    if F <= max_chunk:
        return F
    best = F
    for c in range(128, max_chunk + 1, 128):
        if F % c == 0:
            best = c
    return best


def gpt_forward(idx, targets, params, *, target_tile_rows=None,
                compute_dtype=jnp.bfloat16):
    """idx, targets: int arrays of shape (B, T). Returns (logits (B, T), loss)."""
    b, t = idx.shape
    assert t <= params["wpe"].shape[0], "sequence longer than wpe table"
    E = int(params["wpe"].shape[1])
    F = int(params["w_fc"].shape[0])
    M = b * t

    kind = _device_kind()
    phys_vmem = _physical_vmem_bytes(kind)
    vmem_cap = phys_vmem * 3 // 4                 # 48 MiB on v7x, 96 MiB on v5e/v6e
    if target_tile_rows is None:
        target_tile_rows = 512 if "v7" in kind else 2048

    compute_dtype = jnp.dtype(compute_dtype)
    bf16_elementwise = bool(compute_dtype == jnp.bfloat16
                            and ("v6" in kind or "v7" in kind))
    FC = _pick_hidden_chunk(F)

    def est_vmem(tm):
        const = (_padded_bytes((E, tm), jnp.float32)            # positional tile
                 + _padded_bytes((E, 1), jnp.float32)           # wte column
                 + _padded_bytes((F, E), compute_dtype)         # c_fc weight
                 + _padded_bytes((F, 1), jnp.float32)           # c_fc bias
                 + _padded_bytes((E, F), compute_dtype)         # c_proj weight
                 + _padded_bytes((E, 1), jnp.float32))          # c_proj bias
        io = 2 * (3 * _padded_bytes((1, 1, tm), jnp.float32)    # idx, tgt, logits
                  + _padded_bytes((1, 1, 128), jnp.float32))    # loss partials
        temps = (5 * _padded_bytes((E, tm), jnp.float32)        # x0, y, x, head tmp
                 + _padded_bytes((E, tm), compute_dtype)        # x0 MXU copy
                 + 2 * _padded_bytes((FC, tm), jnp.float32)     # chunk accumulator
                 + _padded_bytes((FC, tm), jnp.bfloat16))       # relu'd chunk
        return 2 * const + io + temps + (2 << 20)

    # Tile selection: whole sequences per tile, best lane-divisibility class,
    # prefer >= 2 grid steps (megacore), largest TM that fits VMEM / target.
    cands = _candidate_seqs(b, t)
    multi = [s for s in cands if b // s >= 2]
    pool = sorted(multi if multi else cands)
    within = [s for s in pool if s * t <= target_tile_rows] or [pool[0]]
    s = within[0]
    for cand in within:
        if est_vmem(cand * t) <= vmem_cap:
            s = cand
    TM = s * t
    num_tiles = M // TM

    f32 = jnp.float32
    idxf = idx.astype(f32).reshape(num_tiles, 1, TM)               # lane-dense
    tgt = targets.astype(f32).reshape(num_tiles, 1, TM)            # lane-dense

    wte_col = params["wte"].astype(f32).reshape(E, 1)
    # positional embedding for ONE tile, transposed (E, TM); stays VMEM resident.
    pos_tile = jnp.tile(params["wpe"][:t].astype(f32).T, (1, s))   # (E, TM)
    w_fc = params["w_fc"].astype(compute_dtype)                    # (F, E) natural
    b_fc = params["b_fc"].astype(f32).reshape(F, 1)
    w_proj = params["w_proj"].astype(compute_dtype)                # (E, F) natural
    b_proj = params["b_proj"].astype(f32).reshape(E, 1)
    b_head = params["b_head"].astype(f32).reshape(1, 1)

    vmem_bytes = int(min(max(est_vmem(TM) + (8 << 20), 32 << 20), vmem_cap))

    cost = pl.CostEstimate(
        flops=int(4 * M * E * F + 8 * M * E + 16 * M),
        transcendentals=int(2 * M),
        bytes_accessed=int(idxf.nbytes + tgt.nbytes + pos_tile.nbytes
                           + wte_col.nbytes + w_fc.nbytes + b_fc.nbytes
                           + w_proj.nbytes + b_proj.nbytes
                           + M * 4 + num_tiles * 128 * 4),
    )

    kernel = functools.partial(_gpt_forward_kernel,
                               hidden_chunk=int(FC),
                               bf16_elementwise=bf16_elementwise,
                               compute_dtype=compute_dtype)

    lane_tile = lambda i: (i, 0, 0)
    const2 = lambda i: (0, 0)

    def build_call(single_buffer_consts):
        ck = {"pipeline_mode": pl.Buffered(1)} if single_buffer_consts else {}
        return pl.pallas_call(
            kernel,
            grid=(num_tiles,),
            in_specs=[
                pl.BlockSpec((1, 1, TM), lane_tile),            # idx (float), lane-dense
                pl.BlockSpec((E, TM), const2, **ck),            # positional tile
                pl.BlockSpec((E, 1), const2, **ck),             # tied wte column
                pl.BlockSpec((F, E), const2, **ck),             # c_fc.weight (natural)
                pl.BlockSpec((F, 1), const2, **ck),             # c_fc.bias
                pl.BlockSpec((E, F), const2, **ck),             # c_proj.weight (natural)
                pl.BlockSpec((E, 1), const2, **ck),             # c_proj.bias
                pl.BlockSpec(memory_space=pltpu.MemorySpace.SMEM),  # tied-head scalar bias
                pl.BlockSpec((1, 1, TM), lane_tile),            # targets, lane-dense
            ],
            out_specs=(
                pl.BlockSpec((1, 1, TM), lane_tile),            # logits, lane-dense
                pl.BlockSpec((1, 1, 128), lane_tile),           # per-tile BCE partial sums
            ),
            out_shape=(
                jax.ShapeDtypeStruct((num_tiles, 1, TM), f32),
                jax.ShapeDtypeStruct((num_tiles, 1, 128), f32),
            ),
            compiler_params=pltpu.CompilerParams(
                dimension_semantics=("parallel",),              # megacore-shardable
                vmem_limit_bytes=vmem_bytes,
            ),
            cost_estimate=cost,
        )

    args = (idxf, pos_tile, wte_col, w_fc, b_fc, w_proj, b_proj, b_head, tgt)
    try:
        logits_t, loss_parts = build_call(True)(*args)
    except Exception:
        # pl.Buffered(1) not supported by this JAX build -> default double buffering.
        logits_t, loss_parts = build_call(False)(*args)

    logits = logits_t.reshape(b, t)
    loss = jnp.sum(loss_parts[:, 0, 0]) / M
    return logits, loss


def init_params(key, n_embd=32, seq_len=8, n_layer=1):
    """Natural (PyTorch-layout) f32 parameters.  Biases are randomized (torch init
    zeroes them) so the bias code paths are actually exercised by the check."""
    k = jax.random.split(key, 7)
    return dict(
        wte=0.02 * jax.random.normal(k[0], (n_embd,), jnp.float32),            # Linear(1,E).weight[:,0]
        wpe=0.02 * jax.random.normal(k[1], (seq_len, n_embd), jnp.float32),    # Embedding(T,E).weight
        w_fc=0.02 * jax.random.normal(k[2], (4 * n_embd, n_embd), jnp.float32),      # Linear(E,4E).weight
        b_fc=0.02 * jax.random.normal(k[3], (4 * n_embd,), jnp.float32),
        w_proj=(0.02 / math.sqrt(2 * n_layer))
               * jax.random.normal(k[4], (n_embd, 4 * n_embd), jnp.float32),         # Linear(4E,E).weight
        b_proj=0.02 * jax.random.normal(k[5], (n_embd,), jnp.float32),
        b_head=0.02 * jax.random.normal(k[6], (1,), jnp.float32),                    # tied-head scalar bias
    )


def gpt_forward_ref(idx, targets, params):
    """Pure-JAX f32 reference (matches the PyTorch forward semantics)."""
    b, t = idx.shape
    x0 = (idx.astype(jnp.float32)[..., None] * params["wte"][None, None, :]
          + params["wpe"][:t][None])
    h = jnp.maximum(x0 @ params["w_fc"].T + params["b_fc"], 0.0)
    y = h @ params["w_proj"].T + params["b_proj"]
    x = x0 + y
    z = x @ params["wte"] + params["b_head"][0]
    tf = targets.astype(jnp.float32)
    sp = lambda v: jnp.maximum(v, 0.0) + jnp.log1p(jnp.exp(-jnp.abs(v)))
    loss = jnp.mean(tf * sp(-z) + (1.0 - tf) * sp(z))
    return z, loss


if __name__ == "__main__":
    B, T, E = 4, 8, 32
    key = jax.random.PRNGKey(0)
    kp, ki, kt = jax.random.split(key, 3)

    params = init_params(kp, n_embd=E, seq_len=T, n_layer=1)
    idx = jax.random.randint(ki, (B, T), 0, 2, dtype=jnp.int32)      # binary markov tokens
    targets = jax.random.randint(kt, (B, T), 0, 2, dtype=jnp.int32)

    logits_ref, loss_ref = gpt_forward_ref(idx, targets, params)

    # default bf16-MXU path; small tile target so this toy shape exercises a
    # multi-tile ("parallel") grid
    logits, loss = gpt_forward(idx, targets, params, target_tile_rows=16)
    jax.block_until_ready((logits, loss))
    assert logits.shape == (B, T)
    assert jnp.allclose(logits, logits_ref, atol=5e-3), "bf16 logits mismatch"
    assert jnp.allclose(loss, loss_ref, atol=5e-3), "bf16 loss mismatch"

    # f32 compute path (closer to the f32 PyTorch semantics), auto tiling
    logits32, loss32 = gpt_forward(idx, targets, params, compute_dtype=jnp.float32)
    jax.block_until_ready((logits32, loss32))
    assert jnp.allclose(logits32, logits_ref, atol=2e-3), "f32 logits mismatch"
    assert jnp.allclose(loss32, loss_ref, atol=2e-3), "f32 loss mismatch"

    print("KERNEL_OK")
</pallas_src>

<mosaic_0001>
module attributes {stable_mosaic.version = 11 : i64} {
  func.func @_gpt_forward_kernel(%arg0: i32, %arg1: memref<1x1x16xf32, #tpu.memory_space<vmem>>, %arg2: memref<32x16xf32, #tpu.memory_space<vmem>>, %arg3: memref<32x1xf32, #tpu.memory_space<vmem>>, %arg4: memref<128x32xbf16, #tpu.memory_space<vmem>>, %arg5: memref<128x1xf32, #tpu.memory_space<vmem>>, %arg6: memref<32x128xbf16, #tpu.memory_space<vmem>>, %arg7: memref<32x1xf32, #tpu.memory_space<vmem>>, %arg8: memref<1x1xf32, #tpu.memory_space<smem>>, %arg9: memref<1x1x16xf32, #tpu.memory_space<vmem>>, %arg10: memref<1x1x16xf32, #tpu.memory_space<vmem>>, %arg11: memref<1x1x128xf32, #tpu.memory_space<vmem>>) attributes {dimension_semantics = [#tpu.dimension_semantics<parallel>], iteration_bounds = array<i64: 2>, scalar_prefetch = 0 : i64, scratch_operands = 0 : i64, tpu.core_type = #tpu.core_type<tc>, window_params = [{transform_indices = @transform_0, window_bounds = array<i64: 1, 1, 16>}, {pipeline_mode = #tpu.pipeline_mode<synchronous>, transform_indices = @transform_1, window_bounds = array<i64: 32, 16>}, {pipeline_mode = #tpu.pipeline_mode<synchronous>, transform_indices = @transform_2, window_bounds = array<i64: 32, 1>}, {pipeline_mode = #tpu.pipeline_mode<synchronous>, transform_indices = @transform_3, window_bounds = array<i64: 128, 32>}, {pipeline_mode = #tpu.pipeline_mode<synchronous>, transform_indices = @transform_4, window_bounds = array<i64: 128, 1>}, {pipeline_mode = #tpu.pipeline_mode<synchronous>, transform_indices = @transform_5, window_bounds = array<i64: 32, 128>}, {pipeline_mode = #tpu.pipeline_mode<synchronous>, transform_indices = @transform_6, window_bounds = array<i64: 32, 1>}, {transform_indices = @transform_7, window_bounds = array<i64: 1, 1>}, {transform_indices = @transform_8, window_bounds = array<i64: 1, 1, 16>}, {transform_indices = @transform_9, window_bounds = array<i64: 1, 1, 16>}, {transform_indices = @transform_10, window_bounds = array<i64: 1, 1, 128>}]} {
    %c0 = arith.constant 0 : index
    %c0_0 = arith.constant 0 : index
    %0 = vector.load %arg3[%c0, %c0_0] : memref<32x1xf32, #tpu.memory_space<vmem>>, vector<32x1xf32>
    %c0_1 = arith.constant 0 : index
    %c0_2 = arith.constant 0 : index
    %c0_3 = arith.constant 0 : index
    %1 = vector.load %arg1[%c0_1, %c0_2, %c0_3] : memref<1x1x16xf32, #tpu.memory_space<vmem>>, vector<1x1x16xf32>
    %2 = vector.shape_cast %1 : vector<1x1x16xf32> to vector<1x16xf32>
    %3 = vector.broadcast %0 : vector<32x1xf32> to vector<32x16xf32>
    %4 = vector.broadcast %2 : vector<1x16xf32> to vector<32x16xf32>
    %5 = arith.mulf %3, %4 : vector<32x16xf32>
    %c0_4 = arith.constant 0 : index
    %c0_5 = arith.constant 0 : index
    %6 = vector.load %arg2[%c0_4, %c0_5] : memref<32x16xf32, #tpu.memory_space<vmem>>, vector<32x16xf32>
    %7 = arith.addf %5, %6 : vector<32x16xf32>
    %8 = arith.truncf %7 : vector<32x16xf32> to vector<32x16xbf16>
    %c0_6 = arith.constant 0 : index
    %c0_7 = arith.constant 0 : index
    %9 = vector.load %arg4[%c0_6, %c0_7] : memref<128x32xbf16, #tpu.memory_space<vmem>>, vector<128x32xbf16>
    %cst = arith.constant dense<0.000000e+00> : vector<128x16xf32>
    %10 = tpu.matmul %9, %8, %cst {dimension_numbers = #tpu.dot_dimension_numbers<[1], [0], [0], [1], [0, 0, 1, 1], [], []>} : vector<128x32xbf16>, vector<32x16xbf16>, vector<128x16xf32> -> vector<128x16xf32>
    %c0_8 = arith.constant 0 : index
    %c0_9 = arith.constant 0 : index
    %11 = vector.load %arg5[%c0_8, %c0_9] : memref<128x1xf32, #tpu.memory_space<vmem>>, vector<128x1xf32>
    %12 = vector.broadcast %11 : vector<128x1xf32> to vector<128x16xf32>
    %13 = arith.addf %10, %12 : vector<128x16xf32>
    %cst_10 = arith.constant 0.000000e+00 : f32
    %14 = vector.broadcast %cst_10 : f32 to vector<128x16xf32>
    %15 = arith.maximumf %13, %14 : vector<128x16xf32>
    %16 = arith.truncf %15 : vector<128x16xf32> to vector<128x16xbf16>
    %c0_11 = arith.constant 0 : index
    %c0_12 = arith.constant 0 : index
    %17 = vector.load %arg6[%c0_11, %c0_12] : memref<32x128xbf16, #tpu.memory_space<vmem>>, vector<32x128xbf16>
    %cst_13 = arith.constant dense<0.000000e+00> : vector<32x16xf32>
    %18 = tpu.matmul %17, %16, %cst_13 {dimension_numbers = #tpu.dot_dimension_numbers<[1], [0], [0], [1], [0, 0, 1, 1], [], []>} : vector<32x128xbf16>, vector<128x16xbf16>, vector<32x16xf32> -> vector<32x16xf32>
    %c0_14 = arith.constant 0 : index
    %c0_15 = arith.constant 0 : index
    %19 = vector.load %arg7[%c0_14, %c0_15] : memref<32x1xf32, #tpu.memory_space<vmem>>, vector<32x1xf32>
    %20 = vector.broadcast %19 : vector<32x1xf32> to vector<32x16xf32>
    %21 = arith.addf %18, %20 : vector<32x16xf32>
    %22 = arith.addf %7, %21 : vector<32x16xf32>
    %23 = vector.broadcast %0 : vector<32x1xf32> to vector<32x16xf32>
    %24 = arith.mulf %22, %23 : vector<32x16xf32>
    %cst_16 = arith.constant dense<0.000000e+00> : vector<16xf32>
    %25 = vector.multi_reduction <add>, %24, %cst_16 [0] : vector<32x16xf32> to vector<16xf32>
    %26 = vector.shape_cast %25 : vector<16xf32> to vector<1x16xf32>
    %c0_17 = arith.constant 0 : index
    %c0_18 = arith.constant 0 : index
    %27 = memref.load %arg8[%c0_17, %c0_18] : memref<1x1xf32, #tpu.memory_space<smem>>
    %28 = vector.broadcast %27 : f32 to vector<1x16xf32>
    %29 = arith.addf %26, %28 : vector<1x16xf32>
    %30 = vector.shape_cast %29 : vector<1x16xf32> to vector<1x1x16xf32>
    %c0_19 = arith.constant 0 : index
    %c0_20 = arith.constant 0 : index
    %c0_21 = arith.constant 0 : index
    %31 = vector.load %arg10[%c0_19, %c0_20, %c0_21] : memref<1x1x16xf32, #tpu.memory_space<vmem>>, vector<1x1x16xf32>
    tpu.vector_store %arg10[%c0_19, %c0_20, %c0_21], %30 {strides = array<i32>} : memref<1x1x16xf32, #tpu.memory_space<vmem>>, vector<1x1x16xf32>,
    %c0_22 = arith.constant 0 : index
    %c0_23 = arith.constant 0 : index
    %c0_24 = arith.constant 0 : index
    %32 = vector.load %arg9[%c0_22, %c0_23, %c0_24] : memref<1x1x16xf32, #tpu.memory_space<vmem>>, vector<1x1x16xf32>
    %33 = vector.shape_cast %32 : vector<1x1x16xf32> to vector<1x16xf32>
    %cst_25 = arith.constant 0.000000e+00 : f32
    %34 = vector.broadcast %cst_25 : f32 to vector<1x16xf32>
    %35 = arith.subf %34, %29 : vector<1x16xf32>
    %cst_26 = arith.constant 0.000000e+00 : f32
    %36 = vector.broadcast %cst_26 : f32 to vector<1x16xf32>
    %37 = arith.maximumf %35, %36 : vector<1x16xf32>
    %38 = math.absf %35 : vector<1x16xf32>
    %cst_27 = arith.constant 0.000000e+00 : f32
    %39 = vector.broadcast %cst_27 : f32 to vector<1x16xf32>
    %40 = arith.subf %39, %38 : vector<1x16xf32>
    %41 = math.exp %40 : vector<1x16xf32>
    %42 = math.log1p %41 : vector<1x16xf32>
    %43 = arith.addf %37, %42 : vector<1x16xf32>
    %44 = arith.mulf %33, %43 : vector<1x16xf32>
    %cst_28 = arith.constant 1.000000e+00 : f32
    %45 = vector.broadcast %cst_28 : f32 to vector<1x16xf32>
    %46 = arith.subf %45, %33 : vector<1x16xf32>
    %cst_29 = arith.constant 0.000000e+00 : f32
    %47 = vector.broadcast %cst_29 : f32 to vector<1x16xf32>
    %48 = arith.maximumf %29, %47 : vector<1x16xf32>
    %49 = math.absf %29 : vector<1x16xf32>
    %cst_30 = arith.constant 0.000000e+00 : f32
    %50 = vector.broadcast %cst_30 : f32 to vector<1x16xf32>
    %51 = arith.subf %50, %49 : vector<1x16xf32>
    %52 = math.exp %51 : vector<1x16xf32>
    %53 = math.log1p %52 : vector<1x16xf32>
    %54 = arith.addf %48, %53 : vector<1x16xf32>
    %55 = arith.mulf %46, %54 : vector<1x16xf32>
    %56 = arith.addf %44, %55 : vector<1x16xf32>
    %cst_31 = arith.constant dense<0.000000e+00> : vector<1xf32>
    %57 = vector.multi_reduction <add>, %56, %cst_31 [1] : vector<1x16xf32> to vector<1xf32>
    %58 = vector.shape_cast %57 : vector<1xf32> to vector<1x1xf32>
    %cst_32 = arith.constant 1.000000e+00 : f32
    %59 = vector.broadcast %cst_32 : f32 to vector<1x128xf32>
    %60 = vector.broadcast %58 : vector<1x1xf32> to vector<1x128xf32>
    %61 = arith.mulf %60, %59 : vector<1x128xf32>
    %62 = vector.shape_cast %61 : vector<1x128xf32> to vector<1x1x128xf32>
    %c0_33 = arith.constant 0 : index
    %c0_34 = arith.constant 0 : index
    %c0_35 = arith.constant 0 : index
    %63 = vector.load %arg11[%c0_33, %c0_34, %c0_35] : memref<1x1x128xf32, #tpu.memory_space<vmem>>, vector<1x1x128xf32>
    tpu.vector_store %arg11[%c0_33, %c0_34, %c0_35], %62 {strides = array<i32>} : memref<1x1x128xf32, #tpu.memory_space<vmem>>, vector<1x1x128xf32>,
    return
  }
  func.func @transform_0(%arg0: i32) -> (i32, i32, i32) {
    %c0_i32 = arith.constant 0 : i32
    %c0_i32_0 = arith.constant 0 : i32
    %c0_i32_1 = arith.constant 0 : i32
    return %arg0, %c0_i32, %c0_i32_0 : i32, i32, i32
  }
  func.func @transform_1(%arg0: i32) -> (i32, i32) {
    %c0_i32 = arith.constant 0 : i32
    %c0_i32_0 = arith.constant 0 : i32
    %c0_i32_1 = arith.constant 0 : i32
    return %c0_i32, %c0_i32_0 : i32, i32
  }
  func.func @transform_2(%arg0: i32) -> (i32, i32) {
    %c0_i32 = arith.constant 0 : i32
    %c0_i32_0 = arith.constant 0 : i32
    %c0_i32_1 = arith.constant 0 : i32
    return %c0_i32, %c0_i32_0 : i32, i32
  }
  func.func @transform_3(%arg0: i32) -> (i32, i32) {
    %c0_i32 = arith.constant 0 : i32
    %c0_i32_0 = arith.constant 0 : i32
    %c0_i32_1 = arith.constant 0 : i32
    return %c0_i32, %c0_i32_0 : i32, i32
  }
  func.func @transform_4(%arg0: i32) -> (i32, i32) {
    %c0_i32 = arith.constant 0 : i32
    %c0_i32_0 = arith.constant 0 : i32
    %c0_i32_1 = arith.constant 0 : i32
    return %c0_i32, %c0_i32_0 : i32, i32
  }
  func.func @transform_5(%arg0: i32) -> (i32, i32) {
    %c0_i32 = arith.constant 0 : i32
    %c0_i32_0 = arith.constant 0 : i32
    %c0_i32_1 = arith.constant 0 : i32
    return %c0_i32, %c0_i32_0 : i32, i32
  }
  func.func @transform_6(%arg0: i32) -> (i32, i32) {
    %c0_i32 = arith.constant 0 : i32
    %c0_i32_0 = arith.constant 0 : i32
    %c0_i32_1 = arith.constant 0 : i32
    return %c0_i32, %c0_i32_0 : i32, i32
  }
  func.func @transform_7(%arg0: i32) -> (i32, i32) {
    %c0_i32 = arith.constant 0 : i32
    %c0_i32_0 = arith.constant 0 : i32
    %c0_i32_1 = arith.constant 0 : i32
    return %c0_i32, %c0_i32_0 : i32, i32
  }
  func.func @transform_8(%arg0: i32) -> (i32, i32, i32) {
    %c0_i32 = arith.constant 0 : i32
    %c0_i32_0 = arith.constant 0 : i32
    %c0_i32_1 = arith.constant 0 : i32
    return %arg0, %c0_i32, %c0_i32_0 : i32, i32, i32
  }
  func.func @transform_9(%arg0: i32) -> (i32, i32, i32) {
    %c0_i32 = arith.constant 0 : i32
    %c0_i32_0 = arith.constant 0 : i32
    %c0_i32_1 = arith.constant 0 : i32
    return %arg0, %c0_i32, %c0_i32_0 : i32, i32, i32
  }
  func.func @transform_10(%arg0: i32) -> (i32, i32, i32) {
    %c0_i32 = arith.constant 0 : i32
    %c0_i32_0 = arith.constant 0 : i32
    %c0_i32_1 = arith.constant 0 : i32
    return %arg0, %c0_i32, %c0_i32_0 : i32, i32, i32
  }
}

module attributes {stable_mosaic.version = 11 : i64} {
  func.func @_gpt_forward_kernel(%arg0: i32, %arg1: memref<1x1x16xf32, #tpu.memory_space<vmem>>, %arg2: memref<32x16xf32, #tpu.memory_space<vmem>>, %arg3: memref<32x1xf32, #tpu.memory_space<vmem>>, %arg4: memref<128x32xbf16, #tpu.memory_space<vmem>>, %arg5: memref<128x1xf32, #tpu.memory_space<vmem>>, %arg6: memref<32x128xbf16, #tpu.memory_space<vmem>>, %arg7: memref<32x1xf32, #tpu.memory_space<vmem>>, %arg8: memref<1x1xf32, #tpu.memory_space<smem>>, %arg9: memref<1x1x16xf32, #tpu.memory_space<vmem>>, %arg10: memref<1x1x16xf32, #tpu.memory_space<vmem>>, %arg11: memref<1x1x128xf32, #tpu.memory_space<vmem>>) attributes {dimension_semantics = [#tpu.dimension_semantics<parallel>], iteration_bounds = array<i64: 2>, scalar_prefetch = 0 : i64, scratch_operands = 0 : i64, tpu.core_type = #tpu.core_type<tc>, window_params = [{transform_indices = @transform_0, window_bounds = array<i64: 1, 1, 16>}, {pipeline_mode = #tpu.pipeline_mode<synchronous>, transform_indices = @transform_1, window_bounds = array<i64: 32, 16>}, {pipeline_mode = #tpu.pipeline_mode<synchronous>, transform_indices = @transform_2, window_bounds = array<i64: 32, 1>}, {pipeline_mode = #tpu.pipeline_mode<synchronous>, transform_indices = @transform_3, window_bounds = array<i64: 128, 32>}, {pipeline_mode = #tpu.pipeline_mode<synchronous>, transform_indices = @transform_4, window_bounds = array<i64: 128, 1>}, {pipeline_mode = #tpu.pipeline_mode<synchronous>, transform_indices = @transform_5, window_bounds = array<i64: 32, 128>}, {pipeline_mode = #tpu.pipeline_mode<synchronous>, transform_indices = @transform_6, window_bounds = array<i64: 32, 1>}, {transform_indices = @transform_7, window_bounds = array<i64: 1, 1>}, {transform_indices = @transform_8, window_bounds = array<i64: 1, 1, 16>}, {transform_indices = @transform_9, window_bounds = array<i64: 1, 1, 16>}, {transform_indices = @transform_10, window_bounds = array<i64: 1, 1, 128>}]} {
    %c0 = arith.constant 0 : index
    %c0_0 = arith.constant 0 : index
    %0 = vector.load %arg3[%c0, %c0_0] : memref<32x1xf32, #tpu.memory_space<vmem>>, vector<32x1xf32>
    %c0_1 = arith.constant 0 : index
    %c0_2 = arith.constant 0 : index
    %c0_3 = arith.constant 0 : index
    %1 = vector.load %arg1[%c0_1, %c0_2, %c0_3] : memref<1x1x16xf32, #tpu.memory_space<vmem>>, vector<1x1x16xf32>
    %2 = vector.shape_cast %1 : vector<1x1x16xf32> to vector<1x16xf32>
    %3 = vector.broadcast %0 : vector<32x1xf32> to vector<32x16xf32>
    %4 = vector.broadcast %2 : vector<1x16xf32> to vector<32x16xf32>
    %5 = arith.mulf %3, %4 : vector<32x16xf32>
    %c0_4 = arith.constant 0 : index
    %c0_5 = arith.constant 0 : index
    %6 = vector.load %arg2[%c0_4, %c0_5] : memref<32x16xf32, #tpu.memory_space<vmem>>, vector<32x16xf32>
    %7 = arith.addf %5, %6 : vector<32x16xf32>
    %8 = arith.truncf %7 : vector<32x16xf32> to vector<32x16xbf16>
    %c0_6 = arith.constant 0 : index
    %c0_7 = arith.constant 0 : index
    %9 = vector.load %arg4[%c0_6, %c0_7] : memref<128x32xbf16, #tpu.memory_space<vmem>>, vector<128x32xbf16>
    %cst = arith.constant dense<0.000000e+00> : vector<128x16xf32>
    %10 = tpu.matmul %9, %8, %cst {dimension_numbers = #tpu.dot_dimension_numbers<[1], [0], [0], [1], [0, 0, 1, 1], [], []>} : vector<128x32xbf16>, vector<32x16xbf16>, vector<128x16xf32> -> vector<128x16xf32>
    %c0_8 = arith.constant 0 : index
    %c0_9 = arith.constant 0 : index
    %11 = vector.load %arg5[%c0_8, %c0_9] : memref<128x1xf32, #tpu.memory_space<vmem>>, vector<128x1xf32>
    %12 = vector.broadcast %11 : vector<128x1xf32> to vector<128x16xf32>
    %13 = arith.addf %10, %12 : vector<128x16xf32>
    %cst_10 = arith.constant 0.000000e+00 : f32
    %14 = vector.broadcast %cst_10 : f32 to vector<128x16xf32>
    %15 = arith.maximumf %13, %14 : vector<128x16xf32>
    %16 = arith.truncf %15 : vector<128x16xf32> to vector<128x16xbf16>
    %c0_11 = arith.constant 0 : index
    %c0_12 = arith.constant 0 : index
    %17 = vector.load %arg6[%c0_11, %c0_12] : memref<32x128xbf16, #tpu.memory_space<vmem>>, vector<32x128xbf16>
    %cst_13 = arith.constant dense<0.000000e+00> : vector<32x16xf32>
    %18 = tpu.matmul %17, %16, %cst_13 {dimension_numbers = #tpu.dot_dimension_numbers<[1], [0], [0], [1], [0, 0, 1, 1], [], []>} : vector<32x128xbf16>, vector<128x16xbf16>, vector<32x16xf32> -> vector<32x16xf32>
    %c0_14 = arith.constant 0 : index
    %c0_15 = arith.constant 0 : index
    %19 = vector.load %arg7[%c0_14, %c0_15] : memref<32x1xf32, #tpu.memory_space<vmem>>, vector<32x1xf32>
    %20 = vector.broadcast %19 : vector<32x1xf32> to vector<32x16xf32>
    %21 = arith.addf %18, %20 : vector<32x16xf32>
    %22 = arith.addf %7, %21 : vector<32x16xf32>
    %23 = vector.broadcast %0 : vector<32x1xf32> to vector<32x16xf32>
    %24 = arith.mulf %22, %23 : vector<32x16xf32>
    %cst_16 = arith.constant dense<0.000000e+00> : vector<16xf32>
    %25 = vector.multi_reduction <add>, %24, %cst_16 [0] : vector<32x16xf32> to vector<16xf32>
    %26 = vector.shape_cast %25 : vector<16xf32> to vector<1x16xf32>
    %c0_17 = arith.constant 0 : index
    %c0_18 = arith.constant 0 : index
    %27 = memref.load %arg8[%c0_17, %c0_18] : memref<1x1xf32, #tpu.memory_space<smem>>
    %28 = vector.broadcast %27 : f32 to vector<1x16xf32>
    %29 = arith.addf %26, %28 : vector<1x16xf32>
    %30 = vector.shape_cast %29 : vector<1x16xf32> to vector<1x1x16xf32>
    %c0_19 = arith.constant 0 : index
    %c0_20 = arith.constant 0 : index
    %c0_21 = arith.constant 0 : index
    %31 = vector.load %arg10[%c0_19, %c0_20, %c0_21] : memref<1x1x16xf32, #tpu.memory_space<vmem>>, vector<1x1x16xf32>
    tpu.vector_store %arg10[%c0_19, %c0_20, %c0_21], %30 {strides = array<i32>} : memref<1x1x16xf32, #tpu.memory_space<vmem>>, vector<1x1x16xf32>,
    %c0_22 = arith.constant 0 : index
    %c0_23 = arith.constant 0 : index
    %c0_24 = arith.constant 0 : index
    %32 = vector.load %arg9[%c0_22, %c0_23, %c0_24] : memref<1x1x16xf32, #tpu.memory_space<vmem>>, vector<1x1x16xf32>
    %33 = vector.shape_cast %32 : vector<1x1x16xf32> to vector<1x16xf32>
    %cst_25 = arith.constant 0.000000e+00 : f32
    %34 = vector.broadcast %cst_25 : f32 to vector<1x16xf32>
    %35 = arith.subf %34, %29 : vector<1x16xf32>
    %cst_26 = arith.constant 0.000000e+00 : f32
    %36 = vector.broadcast %cst_26 : f32 to vector<1x16xf32>
    %37 = arith.maximumf %35, %36 : vector<1x16xf32>
    %38 = math.absf %35 : vector<1x16xf32>
    %cst_27 = arith.constant 0.000000e+00 : f32
    %39 = vector.broadcast %cst_27 : f32 to vector<1x16xf32>
    %40 = arith.subf %39, %38 : vector<1x16xf32>
    %41 = math.exp %40 : vector<1x16xf32>
    %42 = math.log1p %41 : vector<1x16xf32>
    %43 = arith.addf %37, %42 : vector<1x16xf32>
    %44 = arith.mulf %33, %43 : vector<1x16xf32>
    %cst_28 = arith.constant 1.000000e+00 : f32
    %45 = vector.broadcast %cst_28 : f32 to vector<1x16xf32>
    %46 = arith.subf %45, %33 : vector<1x16xf32>
    %cst_29 = arith.constant 0.000000e+00 : f32
    %47 = vector.broadcast %cst_29 : f32 to vector<1x16xf32>
    %48 = arith.maximumf %29, %47 : vector<1x16xf32>
    %49 = math.absf %29 : vector<1x16xf32>
    %cst_30 = arith.constant 0.000000e+00 : f32
    %50 = vector.broadcast %cst_30 : f32 to vector<1x16xf32>
    %51 = arith.subf %50, %49 : vector<1x16xf32>
    %52 = math.exp %51 : vector<1x16xf32>
    %53 = math.log1p %52 : vector<1x16xf32>
    %54 = arith.addf %48, %53 : vector<1x16xf32>
    %55 = arith.mulf %46, %54 : vector<1x16xf32>
    %56 = arith.addf %44, %55 : vector<1x16xf32>
    %cst_31 = arith.constant dense<0.000000e+00> : vector<1xf32>
    %57 = vector.multi_reduction <add>, %56, %cst_31 [1] : vector<1x16xf32> to vector<1xf32>
    %58 = vector.shape_cast %57 : vector<1xf32> to vector<1x1xf32>
    %cst_32 = arith.constant 1.000000e+00 : f32
    %59 = vector.broadcast %cst_32 : f32 to vector<1x128xf32>
    %60 = vector.broadcast %58 : vector<1x1xf32> to vector<1x128xf32>
    %61 = arith.mulf %60, %59 : vector<1x128xf32>
    %62 = vector.shape_cast %61 : vector<1x128xf32> to vector<1x1x128xf32>
    %c0_33 = arith.constant 0 : index
    %c0_34 = arith.constant 0 : index
    %c0_35 = arith.constant 0 : index
    %63 = vector.load %arg11[%c0_33, %c0_34, %c0_35] : memref<1x1x128xf32, #tpu.memory_space<vmem>>, vector<1x1x128xf32>
    tpu.vector_store %arg11[%c0_33, %c0_34, %c0_35], %62 {strides = array<i32>} : memref<1x1x128xf32, #tpu.memory_space<vmem>>, vector<1x1x128xf32>,
    return
  }
  func.func @transform_0(%arg0: i32) -> (i32, i32, i32) {
    %c0_i32 = arith.constant 0 : i32
    %c0_i32_0 = arith.constant 0 : i32
    %c0_i32_1 = arith.constant 0 : i32
    return %arg0, %c0_i32, %c0_i32_0 : i32, i32, i32
  }
  func.func @transform_1(%arg0: i32) -> (i32, i32) {
    %c0_i32 = arith.constant 0 : i32
    %c0_i32_0 = arith.constant 0 : i32
    %c0_i32_1 = arith.constant 0 : i32
    return %c0_i32, %c0_i32_0 : i32, i32
  }
  func.func @transform_2(%arg0: i32) -> (i32, i32) {
    %c0_i32 = arith.constant 0 : i32
    %c0_i32_0 = arith.constant 0 : i32
    %c0_i32_1 = arith.constant 0 : i32
    return %c0_i32, %c0_i32_0 : i32, i32
  }
  func.func @transform_3(%arg0: i32) -> (i32, i32) {
    %c0_i32 = arith.constant 0 : i32
    %c0_i32_0 = arith.constant 0 : i32
    %c0_i32_1 = arith.constant 0 : i32
    return %c0_i32, %c0_i32_0 : i32, i32
  }
  func.func @transform_4(%arg0: i32) -> (i32, i32) {
    %c0_i32 = arith.constant 0 : i32
    %c0_i32_0 = arith.constant 0 : i32
    %c0_i32_1 = arith.constant 0 : i32
    return %c0_i32, %c0_i32_0 : i32, i32
  }
  func.func @transform_5(%arg0: i32) -> (i32, i32) {
    %c0_i32 = arith.constant 0 : i32
    %c0_i32_0 = arith.constant 0 : i32
    %c0_i32_1 = arith.constant 0 : i32
    return %c0_i32, %c0_i32_0 : i32, i32
  }
  func.func @transform_6(%arg0: i32) -> (i32, i32) {
    %c0_i32 = arith.constant 0 : i32
    %c0_i32_0 = arith.constant 0 : i32
    %c0_i32_1 = arith.constant 0 : i32
    return %c0_i32, %c0_i32_0 : i32, i32
  }
  func.func @transform_7(%arg0: i32) -> (i32, i32) {
    %c0_i32 = arith.constant 0 : i32
    %c0_i32_0 = arith.constant 0 : i32
    %c0_i32_1 = arith.constant 0 : i32
    return %c0_i32, %c0_i32_0 : i32, i32
  }
  func.func @transform_8(%arg0: i32) -> (i32, i32, i32) {
    %c0_i32 = arith.constant 0 : i32
    %c0_i32_0 = arith.constant 0 : i32
    %c0_i32_1 = arith.constant 0 : i32
    return %arg0, %c0_i32, %c0_i32_0 : i32, i32, i32
  }
  func.func @transform_9(%arg0: i32) -> (i32, i32, i32) {
    %c0_i32 = arith.constant 0 : i32
    %c0_i32_0 = arith.constant 0 : i32
    %c0_i32_1 = arith.constant 0 : i32
    return %arg0, %c0_i32, %c0_i32_0 : i32, i32, i32
  }
  func.func @transform_10(%arg0: i32) -> (i32, i32, i32) {
    %c0_i32 = arith.constant 0 : i32
    %c0_i32_0 = arith.constant 0 : i32
    %c0_i32_1 = arith.constant 0 : i32
    return %arg0, %c0_i32, %c0_i32_0 : i32, i32, i32
  }
}

</mosaic_0001>

<bundles_post_ra>
// kernel: tpu_custom_call.1
= control target key start
LH: loop header
LB: loop body
LE: loop exit
PB: predicated region body
PF: predicated region fallthrough
CT: control target
= control target key end

     0   :  { %s1487_s0 = inlined_call_operand.vmem [shape: f32[2,1,16], index: 0, kind: input, shape index: {}]   ;;  %s1488_s1 = inlined_call_operand.vmem [shape: f32[32,16], index: 1, kind: input, shape index: {}]   ;;  %s1489_s2 = inlined_call_operand.vmem [shape: f32[32,1], index: 2, kind: input, shape index: {}]   ;;  %s1490_s3 = inlined_call_operand.vmem [shape: bf16[128,32], index: 3, kind: input, shape index: {}]   ;;  %s1491_s4 = inlined_call_operand.vmem [shape: f32[128,1], index: 4, kind: input, shape index: {}]   ;;  %s1492_s5 = inlined_call_operand.vmem [shape: bf16[32,128], index: 5, kind: input, shape index: {}]   ;;  %s1493_s6 = inlined_call_operand.vmem [shape: f32[32,1], index: 6, kind: input, shape index: {}]   ;;  %s1494_s7 = inlined_call_operand.<no memory space> [shape: f32[1,1], index: 7, kind: input, shape index: {}]   ;;  %s1495_s8 = inlined_call_operand.vmem [shape: f32[2,1,16], index: 8, kind: input, shape index: {}]   ;;  %s1496_s9 = inlined_call_operand.hbm [shape: f32[2,1,16], index: 9, kind: output, shape index: {0}]   ;;  %s1497_s10 = inlined_call_operand.hbm [shape: f32[2,1,128], index: 10, kind: output, shape index: {1}]  }
   0x1   :  { %16 = sst [smem:[#allocation2]] %s1494_s7 }
   0x2   :  { %17 = vsyncpa [#allocation4], 0 }
   0x3   :  { %19 = vsyncpa [#allocation4 + $0x1], 0 }
   0x4   :  { %20 = vsyncpa [#allocation6], 0 }
   0x5   :  { %22 = vsyncpa [#allocation6 + $0x1], 0  ;;  %s1202_s15 = smov 0   ;;  %s1204_s16 = smov 0  }
   0x6   :  { %s1206_s17 = smov 0   ;;  %s1208_s18 = smov 0  }
   0x7 LB: > { %s1223_s7 = sadd.s32 4294967295, %s1141_s18   ;;  %s914_s19 = sadd.s32 4294967294, %s1141_s18   ;;  %s1141_s18 = sphi %s1208_s18, %s1505_s18   ;;  %s1137_s17 = sphi %s1206_s17, %s1504_s17   ;;  %s1133_s16 = sphi %s1204_s16, %s1503_s16   ;;  %s1129_s15 = sphi %s1202_s15, %s1502_s15  }
   0x8   : > { %s1227_s20 = sadd.s32 1, %s1141_s18   ;;  %s234_s21 = sadd.s32 1, %s1137_s17 }
   0x9   : > { %s231_s22 = ssub.s32 %s1141_s18, %s1227_s20  ;;  %p244_p0 = scmp.ne.s32.totalorder %s1137_s17, %s1133_s16 }
   0xa   : > { %p232_p1 = scmp.eq.s32.totalorder %s231_s22, 0  ;;  %p245_p2 = scmp.eq.s32.totalorder %s1223_s7, 1 }
   0xb   : > { %p250_p3 = scmp.ne.s32.totalorder %s1133_s16, %s1129_s15  ;;  %p251_p4 = scmp.eq.s32.totalorder %s914_s19, 1 }
   0xc   : > { %s1238_s23 = scalar_select %p232_p1, %s1137_s17, %s234_s21  }
   0xd   : > { %p1240_p5 = por %p245_p2, %p244_p0  ;;  %p1244_p6 = por %p251_p4, %p250_p3 }
   0xe   : > { %p917_p7 = scmp.ge.s32.totalorder %s1141_s18, 1  ;;  %p328_p8 = scmp.lt.s32.totalorder %s1141_s18, 3 }
  0x10   : > { %p329_p9 = pnand %p917_p7, %p328_p8 }
  0x11   : > { %p370_p10 = scmp.lt.s32.totalorder (!%p329_p9), %s1223_s7, 1  ;;  %s750_s14 = sld [smem:[#allocation2]] (!%p329_p9) }
  0x12   : > { %332 = sbr.rel (%p329_p9) target bundleno = 679 (0x2a7), region = 56  ;;  %s1424_s19 = sand.u32 (!%p329_p9), 1, %s1133_s16  }
  0x13   : > { %s363_s21 = scalar_lea.vmem (!%p329_p9), [#allocation3], %s1424_s19  ;;  %s808_s11 = scalar_lea.hbm (!%p329_p9), %s1496_s9, %s1223_s7 }
  0x14   : > { %s810_s12 = sshll.u32 (!%p329_p9), %s363_s21, 4  ;;  %s811_s12 = int_to_ptr.vmem [resolvable:$true] %s810_s12 }
  0x17   : > { %v379_v0 = vld [vmem:[%s1489_s2 + $0x10] sm:$0xff]  ;;  %v377_v1 = vld [vmem:[%s1489_s2] sm:$0xff]  ;;  %v1143_v2 = vmov 0   ;;  %s1258_s30 = scalar_select %p370_p10, %s1223_s7, 1  ;;  %v380_v3 = vld [vmem:[%s1489_s2 + $0x18] sm:$0xff]  ;;  %vm571_vm0 = vcmask 261120  }
  0x18   : > { %1036 = vset.pattern.permute.xlu1 %v1143_v2  ;;  %1035 = vset.pattern.permute.xlu0 %v1143_v2  ;;  %v378_v4 = vld [vmem:[%s1489_s2 + $0x8] sm:$0xff]  ;;  %v447_v5 = vld [vmem:[%s1491_s4 + $0x60] sm:$0xff]  ;;  %v446_v7 = vld [vmem:[%s1491_s4 + $0x58] sm:$0xff]  ;;  %vm736_vm1 = vcmask 130048   ;;  %vm753_vm2 = vcmask 122880  }
  0x19   : > { %394 = vperm.xlu0 %1035, %v379_v0   ;;  %384 = vperm.xlu1 %1036, %v377_v1   ;;  %s372_s13 = scalar_lea.vmem %s1487_s0, %s1258_s30  ;;  %v448_v6 = vld [vmem:[%s1491_s4 + $0x68] sm:$0xff]  ;;  %v443_v8 = vld [vmem:[%s1491_s4 + $0x40] sm:$0xff]  ;;  %v441_v9 = vld [vmem:[%s1491_s4 + $0x30] sm:$0xff]  ;;  %s375_s27 = scalar_lea.vmem %s1495_s8, %s1258_s30 }
  0x1a   : > { %1037 = vset.pattern.permute.xlu2 %v1143_v2  ;;  %v442_v10 = vld [vmem:[%s1491_s4 + $0x38] sm:$0xff]  ;;  %v440_v11 = vld [vmem:[%s1491_s4 + $0x28] sm:$0xff]  ;;  %v437_v12 = vld [vmem:[%s1491_s4 + $0x10] sm:$0xff]  ;;  %s812_s30 = sshll.u32 %s808_s11, 4  ;;  %s813_s30 = int_to_ptr.hbm [resolvable:$true] %s812_s30 }
  0x1b   : > { %v435_v13 = vld [vmem:[%s1491_s4] sm:$0xff]  ;;  %v436_v14 = vld [vmem:[%s1491_s4 + $0x8] sm:$0xff]  ;;  %v675_v16 = vld [vmem:[%s1493_s6 + $0x10] sm:$0xff] }
  0x1c   : > { %v674_v15 = vld [vmem:[%s1493_s6 + $0x8] sm:$0xff]  ;;  %v449_v17 = vld [vmem:[%s1491_s4 + $0x70] sm:$0xff]  ;;  %v450_v18 = vld [vmem:[%s1491_s4 + $0x78] sm:$0xff] }
  0x1d   : > { %523 = vperm.xlu2 %1037, %v449_v17   ;;  %v1038_v21 = vld [vmem:[%s372_s13] ss:$0 sm:$0xff]  ;;  %v445_v23 = vld [vmem:[%s1491_s4 + $0x50] sm:$0xff]  ;;  %v412_v25 = vld [vmem:[%s1488_s1 + $0x18] sm:$0xff]  ;;  %s796_s13 = scalar_lea.sflag [#allocation4], %s1424_s19 }
  0x1e   : > { %v411_v24 = vld [vmem:[%s1488_s1 + $0x10] sm:$0xff]  ;;  %v410_v30 = vld [vmem:[%s1488_s1 + $0x8] sm:$0xff]  ;;  %v409_v34 = vld [vmem:[%s1488_s1] sm:$0xff] }
  0x1f   : > { %v444_v37 = vld [vmem:[%s1491_s4 + $0x48] sm:$0xff]  ;;  %v968_v40 = vld [vmem:[%s1490_s3] sm:$0xff]  ;;  %v971_v41 = vld [vmem:[%s1490_s3 + $0x18] sm:$0xff] }
  0x20   : > { %v974_v42 = vld [vmem:[%s1490_s3 + $0x30] sm:$0xff]  ;;  %v439_v43 = vld [vmem:[%s1491_s4 + $0x20] sm:$0xff]  ;;  %v438_v44 = vld [vmem:[%s1491_s4 + $0x18] sm:$0xff] }
  0x21   : > { %399 = vperm.xlu0 %1035, %v380_v3   ;;  %389 = vperm.xlu1 %1036, %v378_v4   ;;  %v969_v45 = vld [vmem:[%s1490_s3 + $0x8] sm:$0xff]  ;;  %v972_v46 = vld [vmem:[%s1490_s3 + $0x20] sm:$0xff]  ;;  %v975_v47 = vld [vmem:[%s1490_s3 + $0x38] sm:$0xff] }
  0x22   : > { %v673_v48 = vld [vmem:[%s1493_s6] sm:$0xff]  ;;  %v676_v49 = vld [vmem:[%s1493_s6 + $0x18] sm:$0xff]  ;;  %v970_v50 = vld [vmem:[%s1490_s3 + $0x10] sm:$0xff] }
  0x23   : > { %v973_v51 = vld [vmem:[%s1490_s3 + $0x28] sm:$0xff] }
  0x25   : > { %528 = vperm.xlu2 %1037, %v450_v18  }
  0x29   : > { %513 = vperm.xlu0 %1035, %v447_v5   ;;  %518 = vperm.xlu1 %1036, %v448_v6  }
  0x2d   : > { %503 = vperm.xlu2 %1037, %v445_v23  }
  0x31   : > { %508 = vperm.xlu0 %1035, %v446_v7   ;;  %493 = vperm.xlu1 %1036, %v443_v8  }
  0x35   : > { %498 = vperm.xlu2 %1037, %v444_v37  }
  0x39   : > { %483 = vperm.xlu0 %1035, %v441_v9   ;;  %488 = vperm.xlu1 %1036, %v442_v10  }
  0x3d   : > { %473 = vperm.xlu2 %1037, %v439_v43  }
  0x41   : > { %478 = vperm.xlu0 %1035, %v440_v11   ;;  %463 = vperm.xlu1 %1036, %v437_v12  }
  0x45   : > { %468 = vperm.xlu2 %1037, %v438_v44  }
  0x49   : > { %453 = vperm.xlu0 %1035, %v435_v13   ;;  %458 = vperm.xlu1 %1036, %v436_v14  }
  0x4d   : > { %679 = vperm.xlu2 %1037, %v673_v48  }
  0x51   : > { %684 = vperm.xlu0 %1035, %v674_v15   ;;  %689 = vperm.xlu1 %1036, %v675_v16  }
  0x55   : > { %694 = vperm.xlu2 %1037, %v676_v49  }
  0x77   : > { %v524_v55 = vpop.permute.xlu2 %523 }
  0x7f   : > { %v529_v59 = vpop.permute.xlu2 %528 }
  0x87   : > { %v504_v1 = vpop.permute.xlu2 %503 }
  0x8b   : > { %v1312_v19 = vpop.permute.xlu0 %394  ;;  %v1314_v20 = vpop.permute.xlu1 %384 }
  0x8c   : > { %v407_v22 = vmul.f32 %v1038_v21, %v1312_v19  ;;  %v405_v32 = vmul.f32 %v1038_v21, %v1314_v20 }
  0x8e   : > { %v1340_v31 = vadd.f32 %v411_v24, %v407_v22  ;;  %v1355_v38 = vadd.f32 %v409_v34, %v405_v32 }
  0x8f   : > { %v499_v15 = vpop.permute.xlu2 %498 }
  0x93   : > { %v1331_v26 = vpop.permute.xlu0 %399  ;;  %v1333_v27 = vpop.permute.xlu1 %389 }
  0x94   : > { %v408_v28 = vmul.f32 %v1038_v21, %v1331_v26  ;;  %v406_v29 = vmul.f32 %v1038_v21, %v1333_v27 }
  0x96   : > { %v1343_v33 = vadd.f32 %v412_v25, %v408_v28  ;;  %v1348_v35 = vadd.f32 %v410_v30, %v406_v29 }
  0x97   : > { %v474_v30 = vpop.permute.xlu2 %473 }
  0x98   : > { %v418_v36 = vpack.c.bf16 %v1343_v33, %v1340_v31  ;;  %v417_v39 = vpack.c.bf16 %v1348_v35, %v1355_v38 }
  0x9a   : > { %602 = vmatpush.bf16.msra.mxu0 %v418_v36  ;;  %978 = vmatpush.bf16.msra.mxu2 %v418_v36 }
  0x9b   : > { %979 = vmatpush.bf16.msra.mxu3 %v418_v36  ;;  %v519_v60 = vpop.permute.xlu1 %518  ;;  %v514_v0 = vpop.permute.xlu0 %513 }
  0x9e   : > { %603 = vmatpush.bf16.msra.mxu0 %v417_v39  ;;  %980 = vmatpush.bf16.msra.mxu2 %v417_v39 }
  0x9f   : > { %981 = vmatpush.bf16.msra.mxu3 %v417_v39 }
  0xa1   : > { %950 = vmatmul.msk.bf16.vlgmr.msra.gmra.mxu0 %vm571_vm0, %v968_v40  ;;  %953 = vmatmul.msk.bf16.vlgmr.msra.gmra.mxu2 %vm571_vm0, %v971_v41 }
  0xa2   : > { %956 = vmatmul.msk.bf16.vlgmr.msra.gmra.mxu3 %vm571_vm0, %v974_v42 }
  0xa3   : > { %v494_v5 = vpop.permute.xlu1 %493  ;;  %v509_v9 = vpop.permute.xlu0 %508 }
  0xab   : > { %v489_v21 = vpop.permute.xlu1 %488  ;;  %v484_v23 = vpop.permute.xlu0 %483 }
  0xb1   : > { %951 = vmatmul.msk.bf16.gmra.mxu0 %vm571_vm0, %v969_v45  ;;  %954 = vmatmul.msk.bf16.gmra.mxu2 %vm571_vm0, %v972_v46 }
  0xb2   : > { %957 = vmatmul.msk.bf16.gmra.mxu3 %vm571_vm0, %v975_v47 }
  0xb3   : > { %v464_v41 = vpop.permute.xlu1 %463  ;;  %v479_v45 = vpop.permute.xlu0 %478 }
  0xc1   : > { %952 = vmatmul.msk.bf16.gmra.mxu0 %vm571_vm0, %v970_v50  ;;  %955 = vmatmul.msk.bf16.gmra.mxu2 %vm571_vm0, %v973_v51  ;;  %v469_v51 = vpop.permute.xlu2 %468 }
 0x11e   : > { %v1403_v52 = vpop.f32.mrf.mxu0 }
 0x124   : > { %v620_v53 = vpop.f32.mrf.mxu2 }
 0x125   : > { %v635_v54 = vpop.f32.mrf.mxu3  ;;  %v621_v43 = vadd.f32 %v620_v53, %v484_v23  ;;  %v459_v53 = vpop.permute.xlu1 %458 }
 0x126   : > { %v1405_v56 = vpop.f32.mrf.mxu0  ;;  %v636_v10 = vadd.f32 %v635_v54, %v514_v0  ;;  %v454_v0 = vpop.permute.xlu0 %453 }
 0x127   : > { %v651_v49 = vmax.f32 %v621_v43, 0.0 }
 0x128   : > { %v657_v16 = vmax.f32 %v636_v10, 0.0 }
 0x12c   : > { %v622_v57 = vpop.f32.mrf.mxu2 }
 0x12d   : > { %v637_v58 = vpop.f32.mrf.mxu3  ;;  %v623_v37 = vadd.f32 %v622_v57, %v489_v21 }
 0x12e   : > { %v610_v61 = vpop.f32.mrf.mxu0  ;;  %v638_v6 = vadd.f32 %v637_v58, %v519_v60  ;;  %v608_v60 = vadd.f32 %v1405_v56, %v459_v53  ;;  %v977_v56 = vld [vmem:[%s1492_s5 + $0x8] sm:$0xff] }
 0x12f   : > { %v652_v46 = vmax.f32 %v623_v37, 0.0  ;;  %v611_v58 = vadd.f32 %v610_v61, %v464_v41 }
 0x130   : > { %v658_v13 = vmax.f32 %v638_v6, 0.0  ;;  %v976_v6 = vld [vmem:[%s1492_s5] sm:$0xff] }
 0x131   : > { %v664_v57 = vpack.c.bf16 %v652_v46, %v651_v49 }
 0x132   : > { %v667_v18 = vpack.c.bf16 %v658_v13, %v657_v16  ;;  %v685_v13 = vpop.permute.xlu0 %684 }
 0x134   : > { %v625_v62 = vpop.f32.mrf.mxu2 }
 0x135   : > { %v640_v63 = vpop.f32.mrf.mxu3  ;;  %v626_v32 = vadd.f32 %v625_v62, %v494_v5 }
 0x136   : > { %v641_v2 = vadd.f32 %v640_v63, %v524_v55  ;;  %v612_v7 = vpop.f32.mrf.mxu0 }
 0x137   : > { %v653_v44 = vmax.f32 %v626_v32, 0.0  ;;  %v613_v54 = vadd.f32 %v612_v7, %v469_v51  ;;  %v680_v7 = vpop.permute.xlu2 %679 }
 0x138   : > { %v659_v11 = vmax.f32 %v641_v2, 0.0  ;;  %v647_v2 = vmax.f32 %v611_v58, 0.0 }
 0x139   : > { %v648_v62 = vmax.f32 %v613_v54, 0.0 }
 0x13c   : > { %v627_v3 = vpop.f32.mrf.mxu2 }
 0x13d   : > { %v642_v4 = vpop.f32.mrf.mxu3  ;;  %v628_v28 = vadd.f32 %v627_v3, %v499_v15  ;;  %v646_v3 = vmax.f32 %v608_v60, 0.0 }
 0x13e   : > { %v643_v8 = vadd.f32 %v642_v4, %v529_v59  ;;  %v615_v22 = vpop.f32.mrf.mxu0  ;;  %v662_v4 = vpack.c.bf16 %v648_v62, %v647_v2  ;;  %v755_v62 = vld [vmem:[%s375_s27] sm:$0x1]  ;;  %s1067_s27 = scalar_lea.hbm %s1496_s9, 2 }
 0x13f   : > { %v654_v39 = vmax.f32 %v628_v28, 0.0  ;;  %v616_v50 = vadd.f32 %v615_v22, %v474_v30  ;;  %v695_v22 = vpop.permute.xlu2 %694 }
 0x140   : > { %v660_v12 = vmax.f32 %v643_v8, 0.0 }
 0x141   : > { %v665_v48 = vpack.c.bf16 %v654_v39, %v653_v44  ;;  %v649_v59 = vmax.f32 %v616_v50, 0.0 }
 0x142   : > { %v668_v14 = vpack.c.bf16 %v660_v12, %v659_v11 }
 0x144   : > { %709 = vmatpush.bf16.msra.mxu1 %v668_v14  ;;  %982 = vmatpush.bf16.msrb.mxu3 %v668_v14  ;;  %v630_v17 = vpop.f32.mrf.mxu2 }
 0x145   : > { %v631_v24 = vadd.f32 %v630_v17, %v504_v1  ;;  %v606_v1 = vadd.f32 %v1403_v52, %v454_v0 }
 0x146   : > { %v617_v42 = vpop.f32.mrf.mxu0 }
 0x147   : > { %v655_v34 = vmax.f32 %v631_v24, 0.0  ;;  %v618_v47 = vadd.f32 %v617_v42, %v479_v45  ;;  %v645_v5 = vmax.f32 %v606_v1, 0.0 }
 0x148   : > { %710 = vmatpush.bf16.msra.mxu1 %v667_v18  ;;  %983 = vmatpush.bf16.msrb.mxu3 %v667_v18 }
 0x149   : > { %v650_v55 = vmax.f32 %v618_v47, 0.0  ;;  %v661_v61 = vpack.c.bf16 %v646_v3, %v645_v5 }
 0x14b   : > { %v663_v63 = vpack.c.bf16 %v650_v55, %v649_v59 }
 0x14c   : > { %v632_v25 = vpop.f32.mrf.mxu2 }
 0x14d   : > { %v633_v29 = vadd.f32 %v632_v25, %v509_v9  ;;  %v690_v9 = vpop.permute.xlu1 %689 }
 0x14f   : > { %v656_v36 = vmax.f32 %v633_v29, 0.0 }
 0x151   : > { %v666_v40 = vpack.c.bf16 %v656_v36, %v655_v34 }
 0x153   : > { %711 = vmatpush.bf16.msra.mxu1 %v666_v40  ;;  %984 = vmatpush.bf16.msrb.mxu3 %v666_v40 }
 0x157   : > { %712 = vmatpush.bf16.msra.mxu1 %v665_v48  ;;  %985 = vmatpush.bf16.msrb.mxu3 %v665_v48 }
 0x15b   : > { %713 = vmatpush.bf16.msra.mxu1 %v664_v57  ;;  %986 = vmatpush.bf16.msrb.mxu3 %v664_v57 }
 0x15f   : > { %714 = vmatpush.bf16.msra.mxu1 %v663_v63  ;;  %987 = vmatpush.bf16.msrb.mxu3 %v663_v63 }
 0x163   : > { %715 = vmatpush.bf16.msra.mxu1 %v662_v4  ;;  %988 = vmatpush.bf16.msrb.mxu3 %v662_v4 }
 0x167   : > { %716 = vmatpush.bf16.msra.mxu1 %v661_v61  ;;  %989 = vmatpush.bf16.msrb.mxu3 %v661_v61 }
 0x16a   : > { %717 = vmatmul.bf16.vlgmr.msra.gmra.mxu1 %v976_v6  ;;  %722 = vmatmul.bf16.vlgmr.msrb.gmra.mxu3 %v977_v56  ;;  %v773_v56 = vsub.f32 1.0, %v755_v62 }
 0x1e7   : > { %v718_v52 = vpop.f32.mrf.mxu1 }
 0x1e8   : > { %v719_v8 = vadd.f32 %v718_v52, %v680_v7 }
 0x1ea   : > { %v728_v11 = vadd.f32 %v719_v8, %v1355_v38 }
 0x1ec   : > { %v732_v16 = vmul.f32 %v728_v11, %v1314_v20 }
 0x1ed   : > { %v723_v10 = vpop.f32.mrf.mxu3 }
 0x1ee   : > { %v724_v12 = vadd.f32 %v723_v10, %v690_v9  ;;  %v737_v24 = vsel %vm736_vm1, %v732_v16, 0.0 }
 0x1ef   : > { %v720_v14 = vpop.f32.mrf.mxu1 }
 0x1f0   : > { %v721_v15 = vadd.f32 %v720_v14, %v685_v13  ;;  %v730_v17 = vadd.f32 %v724_v12, %v1340_v31 }
 0x1f2   : > { %v729_v18 = vadd.f32 %v721_v15, %v1348_v35  ;;  %v734_v25 = vmul.f32 %v730_v17, %v1312_v19  ;;  %v751_v19 = vstv %s750_s14  ;;  %s1061_s14 = sshra.s32 %s813_s30, 4  ;;  %s1062_s14 = int_to_ptr.hbm [resolvable:$true] %s1061_s14 }
 0x1f3   : > { %p1068_p0 = scmp.lt.s32.totalorder %s1062_s14, %s1496_s9 }
 0x1f4   : > { %v733_v21 = vmul.f32 %v729_v18, %v1333_v27  ;;  %v740_v32 = vsel %vm736_vm1, %v734_v25, 0.0 }
 0x1f5   : > { %v725_v23 = vpop.f32.mrf.mxu3 }
 0x1f6   : > { %v738_v38 = vsel %vm736_vm1, %v733_v21, 0.0  ;;  %v726_v28 = vadd.f32 %v725_v23, %v695_v22 }
 0x1f7   : > { %v739_v29 = vadd.f32 %v738_v38, %v737_v24 }
 0x1f8   : > { %v731_v30 = vadd.f32 %v726_v28, %v1343_v33 }
 0x1f9   : > { %v741_v31 = vadd.f32 %v740_v32, %v739_v29 }
 0x1fa   : > { %v735_v20 = vmul.f32 %v731_v30, %v1331_v26 }
 0x1fc   : > { %v742_v34 = vsel %vm736_vm1, %v735_v20, 0.0 }
 0x1fd   : > { %v743_v35 = vadd.f32 %v742_v34, %v741_v31 }
 0x1ff   : > { %v744_v36 = vrot.slane %v743_v35, 4 }
 0x201   : > { %v745_v27 = vadd.f32 %v744_v36, %v743_v35 }
 0x203   : > { %v746_v37 = vrot.slane %v745_v27, 2 }
 0x205   : > { %v747_v39 = vadd.f32 %v746_v37, %v745_v27 }
 0x207   : > { %v748_v40 = vrot.slane %v747_v39, 1 }
 0x209   : > { %v749_v41 = vadd.f32 %v748_v40, %v747_v39 }
 0x20b   : > { %v752_v42 = vadd.f32 %v751_v19, %v749_v41 }
 0x20d   : > { %v775_v33 = vand.u32 2147483647, %v752_v42  ;;  %v756_v43 = vsub.f32 0.0, %v752_v42  ;;  %754 = vst.msk [vmem:[%s363_s21] sm:$0x1] %vm753_vm2, %v752_v42  ;;  %v774_v2 = vmax.f32 %v752_v42, 0.0 }
 0x20e   : > { %s1063_s21 = scalar_lea.hbm %s1062_s14, 1 }
 0x20f   : > { %v776_v26 = vsub.f32 0.0, %v775_v33  ;;  %v758_v44 = vand.u32 2147483647, %v756_v43  ;;  %v757_v61 = vmax.f32 %v756_v43, 0.0  ;;  %p1064_p11 = scmp.ne.s32.totalorder %s1062_s14, %s1063_s21  ;;  %p1069_p1 = scmp.lt.s32.totalorder %s1067_s27, %s1063_s21 }
 0x211   : > { %v777_v45 = vmul.f32 1.442695, %v776_v26  ;;  %v759_v46 = vsub.f32 0.0, %v758_v44  ;;  %p1065_p12 = pnand %p1064_p11, %p1240_p5  ;;  %p1070_p2 = por %p1069_p1, %p1068_p0 }
 0x213   : > { %1039 = vpow2.f32 %v777_v45  ;;  %v760_v47 = vmul.f32 1.442695, %v759_v46  ;;  %p1066_p13 = pneg %p1065_p12 }
 0x215   : > { %1041 = vpow2.f32 %v760_v47  ;;  %p1071_p3 = pnand %p1070_p2, %p1066_p13 }
 0x219   : > { %v1040_v48 = vpop.eup %1039 }
 0x21a   : > { %v779_v49 = vadd.f32 1.0, %v1040_v48  ;;  %v782_v51 = vmul.f32 -0.5, %v1040_v48  ;;  %v785_v58 = vand.u32 2147483647, %v1040_v48 }
 0x21b   : > { %v1042_v50 = vpop.eup %1041 }
 0x21c   : > { %v762_v54 = vadd.f32 1.0, %v1042_v50  ;;  %1043 = vlog2.f32 %v779_v49  ;;  %v765_v55 = vmul.f32 -0.5, %v1042_v50  ;;  %v783_v57 = vadd.f32 1.0, %v782_v51 }
 0x21d   : > { %v768_v60 = vand.u32 2147483647, %v1042_v50  ;;  %vm786_vm3 = vcmp.lt.f32.partialorder %v785_v58, 0.0004427343 }
 0x21e   : > { %1045 = vlog2.f32 %v762_v54  ;;  %v766_v59 = vadd.f32 1.0, %v765_v55  ;;  %v784_v0 = vmul.f32 %v1040_v48, %v783_v57 }
 0x21f   : > { %vm1436_vm4 = vcmp.lt.f32.partialorder %v768_v60, 0.0004427343 }
 0x220   : > { %v767_v4 = vmul.f32 %v1042_v50, %v766_v59 }
 0x222   : > { %v1044_v53 = vpop.eup %1043 }
 0x223   : > { %v781_v63 = vmul.f32 0.6931472, %v1044_v53 }
 0x224   : > { %v1046_v1 = vpop.eup %1045 }
 0x225   : > { %v764_v3 = vmul.f32 0.6931472, %v1046_v1  ;;  %v787_v5 = vsel %vm786_vm3, %v784_v0, %v781_v63 }
 0x226   : > { %v788_v52 = vadd.f32 %v787_v5, %v774_v2 }
 0x227   : > { %v770_v7 = vsel %vm1436_vm4, %v767_v4, %v764_v3 }
 0x228   : > { %1074 = shalt.err (!%p1071_p3)
}
 0x229   : > { %990 = dma.vmem_to_hbm [thread:$0]  (%p1240_p5), %s811_s12, 16, %s813_s30, %s796_s13   ;;  %v771_v8 = vadd.f32 %v770_v7, %v757_v61  ;;  %v789_v10 = vmul.f32 %v788_v52, %v773_v56 }
 0x22a   : > { %s821_s21 = scalar_lea.hbm %s1497_s10, %s1223_s7  ;;  %s369_s22 = scalar_lea.vmem [#allocation5], %s1424_s19 }
 0x22b   : > { %v772_v9 = vmul.f32 %v771_v8, %v755_v62  ;;  %s823_s26 = sshll.u32 %s369_s22, 4  ;;  %s825_s27 = sshll.u32 %s821_s21, 4  ;;  %s824_s26 = int_to_ptr.vmem [resolvable:$true] %s823_s26  ;;  %s826_s27 = int_to_ptr.hbm [resolvable:$true] %s825_s27 }
 0x22c   : > { %s800_s12 = scalar_lea.sflag [#allocation6], %s1424_s19  ;;  %s1089_s30 = sshra.s32 %s826_s27, 4  ;;  %s1090_s30 = int_to_ptr.hbm [resolvable:$true] %s1089_s30 }
 0x22d   : > { %v790_v11 = vadd.f32 %v789_v10, %v772_v9  ;;  %s1091_s13 = scalar_lea.hbm %s1090_s30, 1  ;;  %s1095_s11 = scalar_lea.hbm %s1497_s10, 2 }
 0x22e   : > { %p1092_p4 = scmp.ne.s32.totalorder %s1090_s30, %s1091_s13  ;;  %p1096_p9 = scmp.lt.s32.totalorder %s1090_s30, %s1497_s10 }
 0x22f   : > { %v791_v12 = vsel %vm753_vm2, %v790_v11, 0.0  ;;  %p1097_p10 = scmp.lt.s32.totalorder %s1095_s11, %s1091_s13 }
 0x230   : > { %792 = vadd.xlane.f32.xlu0 %v791_v12  ;;  %p1093_p7 = pnand %p1092_p4, %p1240_p5 }
 0x231   : > { %p1098_p11 = por %p1097_p10, %p1096_p9 }
 0x232   : > { %p1094_p8 = pneg %p1093_p7 }
 0x234   : > { %p1099_p12 = pnand %p1098_p11, %p1094_p8 }
 0x2a3   : > { %v793_v13 = vpop.xlane.xlu0 %792 }
 0x2a4   : > { %794 = vst [vmem:[%s369_s22] sm:$0x1] %v793_v13 }
 0x2a5   : > { %1102 = shalt.err (!%p1099_p12)
}
 0x2a6   : > { %991 = dma.vmem_to_hbm [thread:$0]  (%p1240_p5), %s824_s26, 16, %s826_s27, %s800_s12  }
 0x2a7 PF: > { %p1001_p13 = scmp.ge.s32.totalorder %s1141_s18, 2  ;;  %s837_s19 = sand.u32 1, %s1129_s15  }
 0x2a8   : > { %s838_s21 = scalar_lea.sflag [#allocation4], %s837_s19 }
 0x2a9   : > { %p995_p0 = pnand %p1001_p13, %p1244_p6 }
 0x2ab   : > { %p996_p1 = pneg %p995_p0 }
 0x2ad   : > { %1120 = dma.done.wait (%p996_p1), %s838_s21, 16  }
 0x2ae   : > { %1122 = vsyncadd (%p996_p1), %s838_s21, 4294967280  ;;  %s847_s22 = scalar_lea.sflag [#allocation6], %s837_s19 }
 0x2af   : > { %1124 = dma.done.wait (%p996_p1), %s847_s22, 16  }
 0x2b0   : > { %1126 = vsyncadd (%p996_p1), %s847_s22, 4294967280  ;;  %p25_p5 = scmp.ge.s32.totalorder %s1227_s20, 4   ;;  %s1502_s15 = smov %s1133_s16 }
 0x2b1   : > { %s1503_s16 = smov %s1137_s17  ;;  %s1504_s17 = smov %s1238_s23 }
 0x2b2   : > { %s1505_s18 = smov %s1227_s20  ;;  %27 = sbr.rel (!%p25_p5) target bundleno = 7 (0x7), region = 111 }
 0x2b7   :  { %852 = vsyncpa [#allocation4], 1 }
 0x2b8   :  { %854 = vsyncpa [#allocation4 + $0x1], 1 }
 0x2b9   :  { %855 = vsyncpa [#allocation6], 1 }
 0x2ba   :  { %857 = vsyncpa [#allocation6 + $0x1], 1 }

// kernel: tpu_custom_call.1
= control target key start
LH: loop header
LB: loop body
LE: loop exit
PB: predicated region body
PF: predicated region fallthrough
CT: control target
= control target key end

     0   :  { %s1487_s0 = inlined_call_operand.vmem [shape: f32[2,1,16], index: 0, kind: input, shape index: {}]   ;;  %s1488_s1 = inlined_call_operand.vmem [shape: f32[32,16], index: 1, kind: input, shape index: {}]   ;;  %s1489_s2 = inlined_call_operand.vmem [shape: f32[32,1], index: 2, kind: input, shape index: {}]   ;;  %s1490_s3 = inlined_call_operand.vmem [shape: bf16[128,32], index: 3, kind: input, shape index: {}]   ;;  %s1491_s4 = inlined_call_operand.vmem [shape: f32[128,1], index: 4, kind: input, shape index: {}]   ;;  %s1492_s5 = inlined_call_operand.vmem [shape: bf16[32,128], index: 5, kind: input, shape index: {}]   ;;  %s1493_s6 = inlined_call_operand.vmem [shape: f32[32,1], index: 6, kind: input, shape index: {}]   ;;  %s1494_s7 = inlined_call_operand.<no memory space> [shape: f32[1,1], index: 7, kind: input, shape index: {}]   ;;  %s1495_s8 = inlined_call_operand.vmem [shape: f32[2,1,16], index: 8, kind: input, shape index: {}]   ;;  %s1496_s9 = inlined_call_operand.hbm [shape: f32[2,1,16], index: 9, kind: output, shape index: {0}]   ;;  %s1497_s10 = inlined_call_operand.hbm [shape: f32[2,1,128], index: 10, kind: output, shape index: {1}]  }
   0x1   :  { %16 = sst [smem:[#allocation2]] %s1494_s7 }
   0x2   :  { %17 = vsyncpa [#allocation4], 0 }
   0x3   :  { %19 = vsyncpa [#allocation4 + $0x1], 0 }
   0x4   :  { %20 = vsyncpa [#allocation6], 0 }
   0x5   :  { %22 = vsyncpa [#allocation6 + $0x1], 0  ;;  %s1202_s15 = smov 0   ;;  %s1204_s16 = smov 0  }
   0x6   :  { %s1206_s17 = smov 0   ;;  %s1208_s18 = smov 0  }
   0x7 LB: > { %s1223_s7 = sadd.s32 4294967295, %s1141_s18   ;;  %s914_s19 = sadd.s32 4294967294, %s1141_s18   ;;  %s1141_s18 = sphi %s1208_s18, %s1505_s18   ;;  %s1137_s17 = sphi %s1206_s17, %s1504_s17   ;;  %s1133_s16 = sphi %s1204_s16, %s1503_s16   ;;  %s1129_s15 = sphi %s1202_s15, %s1502_s15  }
   0x8   : > { %s1227_s20 = sadd.s32 1, %s1141_s18   ;;  %s234_s21 = sadd.s32 1, %s1137_s17 }
   0x9   : > { %s231_s22 = ssub.s32 %s1141_s18, %s1227_s20  ;;  %p244_p0 = scmp.ne.s32.totalorder %s1137_s17, %s1133_s16 }
   0xa   : > { %p232_p1 = scmp.eq.s32.totalorder %s231_s22, 0  ;;  %p245_p2 = scmp.eq.s32.totalorder %s1223_s7, 1 }
   0xb   : > { %p250_p3 = scmp.ne.s32.totalorder %s1133_s16, %s1129_s15  ;;  %p251_p4 = scmp.eq.s32.totalorder %s914_s19, 1 }
   0xc   : > { %s1238_s23 = scalar_select %p232_p1, %s1137_s17, %s234_s21  }
   0xd   : > { %p1240_p5 = por %p245_p2, %p244_p0  ;;  %p1244_p6 = por %p251_p4, %p250_p3 }
   0xe   : > { %p917_p7 = scmp.ge.s32.totalorder %s1141_s18, 1  ;;  %p328_p8 = scmp.lt.s32.totalorder %s1141_s18, 3 }
  0x10   : > { %p329_p9 = pnand %p917_p7, %p328_p8 }
  0x11   : > { %p370_p10 = scmp.lt.s32.totalorder (!%p329_p9), %s1223_s7, 1  ;;  %s750_s14 = sld [smem:[#allocation2]] (!%p329_p9) }
  0x12   : > { %332 = sbr.rel (%p329_p9) target bundleno = 679 (0x2a7), region = 56  ;;  %s1424_s19 = sand.u32 (!%p329_p9), 1, %s1133_s16  }
  0x13   : > { %s363_s21 = scalar_lea.vmem (!%p329_p9), [#allocation3], %s1424_s19  ;;  %s808_s11 = scalar_lea.hbm (!%p329_p9), %s1496_s9, %s1223_s7 }
  0x14   : > { %s810_s12 = sshll.u32 (!%p329_p9), %s363_s21, 4  ;;  %s811_s12 = int_to_ptr.vmem [resolvable:$true] %s810_s12 }
  0x17   : > { %v379_v0 = vld [vmem:[%s1489_s2 + $0x10] sm:$0xff]  ;;  %v377_v1 = vld [vmem:[%s1489_s2] sm:$0xff]  ;;  %v1143_v2 = vmov 0   ;;  %s1258_s30 = scalar_select %p370_p10, %s1223_s7, 1  ;;  %v380_v3 = vld [vmem:[%s1489_s2 + $0x18] sm:$0xff]  ;;  %vm571_vm0 = vcmask 261120  }
  0x18   : > { %1036 = vset.pattern.permute.xlu1 %v1143_v2  ;;  %1035 = vset.pattern.permute.xlu0 %v1143_v2  ;;  %v378_v4 = vld [vmem:[%s1489_s2 + $0x8] sm:$0xff]  ;;  %v447_v5 = vld [vmem:[%s1491_s4 + $0x60] sm:$0xff]  ;;  %v446_v7 = vld [vmem:[%s1491_s4 + $0x58] sm:$0xff]  ;;  %vm736_vm1 = vcmask 130048   ;;  %vm753_vm2 = vcmask 122880  }
  0x19   : > { %394 = vperm.xlu0 %1035, %v379_v0   ;;  %384 = vperm.xlu1 %1036, %v377_v1   ;;  %s372_s13 = scalar_lea.vmem %s1487_s0, %s1258_s30  ;;  %v448_v6 = vld [vmem:[%s1491_s4 + $0x68] sm:$0xff]  ;;  %v443_v8 = vld [vmem:[%s1491_s4 + $0x40] sm:$0xff]  ;;  %v441_v9 = vld [vmem:[%s1491_s4 + $0x30] sm:$0xff]  ;;  %s375_s27 = scalar_lea.vmem %s1495_s8, %s1258_s30 }
  0x1a   : > { %1037 = vset.pattern.permute.xlu2 %v1143_v2  ;;  %v442_v10 = vld [vmem:[%s1491_s4 + $0x38] sm:$0xff]  ;;  %v440_v11 = vld [vmem:[%s1491_s4 + $0x28] sm:$0xff]  ;;  %v437_v12 = vld [vmem:[%s1491_s4 + $0x10] sm:$0xff]  ;;  %s812_s30 = sshll.u32 %s808_s11, 4  ;;  %s813_s30 = int_to_ptr.hbm [resolvable:$true] %s812_s30 }
  0x1b   : > { %v435_v13 = vld [vmem:[%s1491_s4] sm:$0xff]  ;;  %v436_v14 = vld [vmem:[%s1491_s4 + $0x8] sm:$0xff]  ;;  %v675_v16 = vld [vmem:[%s1493_s6 + $0x10] sm:$0xff] }
  0x1c   : > { %v674_v15 = vld [vmem:[%s1493_s6 + $0x8] sm:$0xff]  ;;  %v449_v17 = vld [vmem:[%s1491_s4 + $0x70] sm:$0xff]  ;;  %v450_v18 = vld [vmem:[%s1491_s4 + $0x78] sm:$0xff] }
  0x1d   : > { %523 = vperm.xlu2 %1037, %v449_v17   ;;  %v1038_v21 = vld [vmem:[%s372_s13] ss:$0 sm:$0xff]  ;;  %v445_v23 = vld [vmem:[%s1491_s4 + $0x50] sm:$0xff]  ;;  %v412_v25 = vld [vmem:[%s1488_s1 + $0x18] sm:$0xff]  ;;  %s796_s13 = scalar_lea.sflag [#allocation4], %s1424_s19 }
  0x1e   : > { %v411_v24 = vld [vmem:[%s1488_s1 + $0x10] sm:$0xff]  ;;  %v410_v30 = vld [vmem:[%s1488_s1 + $0x8] sm:$0xff]  ;;  %v409_v34 = vld [vmem:[%s1488_s1] sm:$0xff] }
  0x1f   : > { %v444_v37 = vld [vmem:[%s1491_s4 + $0x48] sm:$0xff]  ;;  %v968_v40 = vld [vmem:[%s1490_s3] sm:$0xff]  ;;  %v971_v41 = vld [vmem:[%s1490_s3 + $0x18] sm:$0xff] }
  0x20   : > { %v974_v42 = vld [vmem:[%s1490_s3 + $0x30] sm:$0xff]  ;;  %v439_v43 = vld [vmem:[%s1491_s4 + $0x20] sm:$0xff]  ;;  %v438_v44 = vld [vmem:[%s1491_s4 + $0x18] sm:$0xff] }
  0x21   : > { %399 = vperm.xlu0 %1035, %v380_v3   ;;  %389 = vperm.xlu1 %1036, %v378_v4   ;;  %v969_v45 = vld [vmem:[%s1490_s3 + $0x8] sm:$0xff]  ;;  %v972_v46 = vld [vmem:[%s1490_s3 + $0x20] sm:$0xff]  ;;  %v975_v47 = vld [vmem:[%s1490_s3 + $0x38] sm:$0xff] }
  0x22   : > { %v673_v48 = vld [vmem:[%s1493_s6] sm:$0xff]  ;;  %v676_v49 = vld [vmem:[%s1493_s6 + $0x18] sm:$0xff]  ;;  %v970_v50 = vld [vmem:[%s1490_s3 + $0x10] sm:$0xff] }
  0x23   : > { %v973_v51 = vld [vmem:[%s1490_s3 + $0x28] sm:$0xff] }
  0x25   : > { %528 = vperm.xlu2 %1037, %v450_v18  }
  0x29   : > { %513 = vperm.xlu0 %1035, %v447_v5   ;;  %518 = vperm.xlu1 %1036, %v448_v6  }
  0x2d   : > { %503 = vperm.xlu2 %1037, %v445_v23  }
  0x31   : > { %508 = vperm.xlu0 %1035, %v446_v7   ;;  %493 = vperm.xlu1 %1036, %v443_v8  }
  0x35   : > { %498 = vperm.xlu2 %1037, %v444_v37  }
  0x39   : > { %483 = vperm.xlu0 %1035, %v441_v9   ;;  %488 = vperm.xlu1 %1036, %v442_v10  }
  0x3d   : > { %473 = vperm.xlu2 %1037, %v439_v43  }
  0x41   : > { %478 = vperm.xlu0 %1035, %v440_v11   ;;  %463 = vperm.xlu1 %1036, %v437_v12  }
  0x45   : > { %468 = vperm.xlu2 %1037, %v438_v44  }
  0x49   : > { %453 = vperm.xlu0 %1035, %v435_v13   ;;  %458 = vperm.xlu1 %1036, %v436_v14  }
  0x4d   : > { %679 = vperm.xlu2 %1037, %v673_v48  }
  0x51   : > { %684 = vperm.xlu0 %1035, %v674_v15   ;;  %689 = vperm.xlu1 %1036, %v675_v16  }
  0x55   : > { %694 = vperm.xlu2 %1037, %v676_v49  }
  0x77   : > { %v524_v55 = vpop.permute.xlu2 %523 }
  0x7f   : > { %v529_v59 = vpop.permute.xlu2 %528 }
  0x87   : > { %v504_v1 = vpop.permute.xlu2 %503 }
  0x8b   : > { %v1312_v19 = vpop.permute.xlu0 %394  ;;  %v1314_v20 = vpop.permute.xlu1 %384 }
  0x8c   : > { %v407_v22 = vmul.f32 %v1038_v21, %v1312_v19  ;;  %v405_v32 = vmul.f32 %v1038_v21, %v1314_v20 }
  0x8e   : > { %v1340_v31 = vadd.f32 %v411_v24, %v407_v22  ;;  %v1355_v38 = vadd.f32 %v409_v34, %v405_v32 }
  0x8f   : > { %v499_v15 = vpop.permute.xlu2 %498 }
  0x93   : > { %v1331_v26 = vpop.permute.xlu0 %399  ;;  %v1333_v27 = vpop.permute.xlu1 %389 }
  0x94   : > { %v408_v28 = vmul.f32 %v1038_v21, %v1331_v26  ;;  %v406_v29 = vmul.f32 %v1038_v21, %v1333_v27 }
  0x96   : > { %v1343_v33 = vadd.f32 %v412_v25, %v408_v28  ;;  %v1348_v35 = vadd.f32 %v410_v30, %v406_v29 }
  0x97   : > { %v474_v30 = vpop.permute.xlu2 %473 }
  0x98   : > { %v418_v36 = vpack.c.bf16 %v1343_v33, %v1340_v31  ;;  %v417_v39 = vpack.c.bf16 %v1348_v35, %v1355_v38 }
  0x9a   : > { %602 = vmatpush.bf16.msra.mxu0 %v418_v36  ;;  %978 = vmatpush.bf16.msra.mxu2 %v418_v36 }
  0x9b   : > { %979 = vmatpush.bf16.msra.mxu3 %v418_v36  ;;  %v519_v60 = vpop.permute.xlu1 %518  ;;  %v514_v0 = vpop.permute.xlu0 %513 }
  0x9e   : > { %603 = vmatpush.bf16.msra.mxu0 %v417_v39  ;;  %980 = vmatpush.bf16.msra.mxu2 %v417_v39 }
  0x9f   : > { %981 = vmatpush.bf16.msra.mxu3 %v417_v39 }
  0xa1   : > { %950 = vmatmul.msk.bf16.vlgmr.msra.gmra.mxu0 %vm571_vm0, %v968_v40  ;;  %953 = vmatmul.msk.bf16.vlgmr.msra.gmra.mxu2 %vm571_vm0, %v971_v41 }
  0xa2   : > { %956 = vmatmul.msk.bf16.vlgmr.msra.gmra.mxu3 %vm571_vm0, %v974_v42 }
  0xa3   : > { %v494_v5 = vpop.permute.xlu1 %493  ;;  %v509_v9 = vpop.permute.xlu0 %508 }
  0xab   : > { %v489_v21 = vpop.permute.xlu1 %488  ;;  %v484_v23 = vpop.permute.xlu0 %483 }
  0xb1   : > { %951 = vmatmul.msk.bf16.gmra.mxu0 %vm571_vm0, %v969_v45  ;;  %954 = vmatmul.msk.bf16.gmra.mxu2 %vm571_vm0, %v972_v46 }
  0xb2   : > { %957 = vmatmul.msk.bf16.gmra.mxu3 %vm571_vm0, %v975_v47 }
  0xb3   : > { %v464_v41 = vpop.permute.xlu1 %463  ;;  %v479_v45 = vpop.permute.xlu0 %478 }
  0xc1   : > { %952 = vmatmul.msk.bf16.gmra.mxu0 %vm571_vm0, %v970_v50  ;;  %955 = vmatmul.msk.bf16.gmra.mxu2 %vm571_vm0, %v973_v51  ;;  %v469_v51 = vpop.permute.xlu2 %468 }
 0x11e   : > { %v1403_v52 = vpop.f32.mrf.mxu0 }
 0x124   : > { %v620_v53 = vpop.f32.mrf.mxu2 }
 0x125   : > { %v635_v54 = vpop.f32.mrf.mxu3  ;;  %v621_v43 = vadd.f32 %v620_v53, %v484_v23  ;;  %v459_v53 = vpop.permute.xlu1 %458 }
 0x126   : > { %v1405_v56 = vpop.f32.mrf.mxu0  ;;  %v636_v10 = vadd.f32 %v635_v54, %v514_v0  ;;  %v454_v0 = vpop.permute.xlu0 %453 }
 0x127   : > { %v651_v49 = vmax.f32 %v621_v43, 0.0 }
 0x128   : > { %v657_v16 = vmax.f32 %v636_v10, 0.0 }
 0x12c   : > { %v622_v57 = vpop.f32.mrf.mxu2 }
 0x12d   : > { %v637_v58 = vpop.f32.mrf.mxu3  ;;  %v623_v37 = vadd.f32 %v622_v57, %v489_v21 }
 0x12e   : > { %v610_v61 = vpop.f32.mrf.mxu0  ;;  %v638_v6 = vadd.f32 %v637_v58, %v519_v60  ;;  %v608_v60 = vadd.f32 %v1405_v56, %v459_v53  ;;  %v977_v56 = vld [vmem:[%s1492_s5 + $0x8] sm:$0xff] }
 0x12f   : > { %v652_v46 = vmax.f32 %v623_v37, 0.0  ;;  %v611_v58 = vadd.f32 %v610_v61, %v464_v41 }
 0x130   : > { %v658_v13 = vmax.f32 %v638_v6, 0.0  ;;  %v976_v6 = vld [vmem:[%s1492_s5] sm:$0xff] }
 0x131   : > { %v664_v57 = vpack.c.bf16 %v652_v46, %v651_v49 }
 0x132   : > { %v667_v18 = vpack.c.bf16 %v658_v13, %v657_v16  ;;  %v685_v13 = vpop.permute.xlu0 %684 }
 0x134   : > { %v625_v62 = vpop.f32.mrf.mxu2 }
 0x135   : > { %v640_v63 = vpop.f32.mrf.mxu3  ;;  %v626_v32 = vadd.f32 %v625_v62, %v494_v5 }
 0x136   : > { %v641_v2 = vadd.f32 %v640_v63, %v524_v55  ;;  %v612_v7 = vpop.f32.mrf.mxu0 }
 0x137   : > { %v653_v44 = vmax.f32 %v626_v32, 0.0  ;;  %v613_v54 = vadd.f32 %v612_v7, %v469_v51  ;;  %v680_v7 = vpop.permute.xlu2 %679 }
 0x138   : > { %v659_v11 = vmax.f32 %v641_v2, 0.0  ;;  %v647_v2 = vmax.f32 %v611_v58, 0.0 }
 0x139   : > { %v648_v62 = vmax.f32 %v613_v54, 0.0 }
 0x13c   : > { %v627_v3 = vpop.f32.mrf.mxu2 }
 0x13d   : > { %v642_v4 = vpop.f32.mrf.mxu3  ;;  %v628_v28 = vadd.f32 %v627_v3, %v499_v15  ;;  %v646_v3 = vmax.f32 %v608_v60, 0.0 }
 0x13e   : > { %v643_v8 = vadd.f32 %v642_v4, %v529_v59  ;;  %v615_v22 = vpop.f32.mrf.mxu0  ;;  %v662_v4 = vpack.c.bf16 %v648_v62, %v647_v2  ;;  %v755_v62 = vld [vmem:[%s375_s27] sm:$0x1]  ;;  %s1067_s27 = scalar_lea.hbm %s1496_s9, 2 }
 0x13f   : > { %v654_v39 = vmax.f32 %v628_v28, 0.0  ;;  %v616_v50 = vadd.f32 %v615_v22, %v474_v30  ;;  %v695_v22 = vpop.permute.xlu2 %694 }
 0x140   : > { %v660_v12 = vmax.f32 %v643_v8, 0.0 }
 0x141   : > { %v665_v48 = vpack.c.bf16 %v654_v39, %v653_v44  ;;  %v649_v59 = vmax.f32 %v616_v50, 0.0 }
 0x142   : > { %v668_v14 = vpack.c.bf16 %v660_v12, %v659_v11 }
 0x144   : > { %709 = vmatpush.bf16.msra.mxu1 %v668_v14  ;;  %982 = vmatpush.bf16.msrb.mxu3 %v668_v14  ;;  %v630_v17 = vpop.f32.mrf.mxu2 }
 0x145   : > { %v631_v24 = vadd.f32 %v630_v17, %v504_v1  ;;  %v606_v1 = vadd.f32 %v1403_v52, %v454_v0 }
 0x146   : > { %v617_v42 = vpop.f32.mrf.mxu0 }
 0x147   : > { %v655_v34 = vmax.f32 %v631_v24, 0.0  ;;  %v618_v47 = vadd.f32 %v617_v42, %v479_v45  ;;  %v645_v5 = vmax.f32 %v606_v1, 0.0 }
 0x148   : > { %710 = vmatpush.bf16.msra.mxu1 %v667_v18  ;;  %983 = vmatpush.bf16.msrb.mxu3 %v667_v18 }
 0x149   : > { %v650_v55 = vmax.f32 %v618_v47, 0.0  ;;  %v661_v61 = vpack.c.bf16 %v646_v3, %v645_v5 }
 0x14b   : > { %v663_v63 = vpack.c.bf16 %v650_v55, %v649_v59 }
 0x14c   : > { %v632_v25 = vpop.f32.mrf.mxu2 }
 0x14d   : > { %v633_v29 = vadd.f32 %v632_v25, %v509_v9  ;;  %v690_v9 = vpop.permute.xlu1 %689 }
 0x14f   : > { %v656_v36 = vmax.f32 %v633_v29, 0.0 }
 0x151   : > { %v666_v40 = vpack.c.bf16 %v656_v36, %v655_v34 }
 0x153   : > { %711 = vmatpush.bf16.msra.mxu1 %v666_v40  ;;  %984 = vmatpush.bf16.msrb.mxu3 %v666_v40 }
 0x157   : > { %712 = vmatpush.bf16.msra.mxu1 %v665_v48  ;;  %985 = vmatpush.bf16.msrb.mxu3 %v665_v48 }
 0x15b   : > { %713 = vmatpush.bf16.msra.mxu1 %v664_v57  ;;  %986 = vmatpush.bf16.msrb.mxu3 %v664_v57 }
 0x15f   : > { %714 = vmatpush.bf16.msra.mxu1 %v663_v63  ;;  %987 = vmatpush.bf16.msrb.mxu3 %v663_v63 }
 0x163   : > { %715 = vmatpush.bf16.msra.mxu1 %v662_v4  ;;  %988 = vmatpush.bf16.msrb.mxu3 %v662_v4 }
 0x167   : > { %716 = vmatpush.bf16.msra.mxu1 %v661_v61  ;;  %989 = vmatpush.bf16.msrb.mxu3 %v661_v61 }
 0x16a   : > { %717 = vmatmul.bf16.vlgmr.msra.gmra.mxu1 %v976_v6  ;;  %722 = vmatmul.bf16.vlgmr.msrb.gmra.mxu3 %v977_v56  ;;  %v773_v56 = vsub.f32 1.0, %v755_v62 }
 0x1e7   : > { %v718_v52 = vpop.f32.mrf.mxu1 }
 0x1e8   : > { %v719_v8 = vadd.f32 %v718_v52, %v680_v7 }
 0x1ea   : > { %v728_v11 = vadd.f32 %v719_v8, %v1355_v38 }
 0x1ec   : > { %v732_v16 = vmul.f32 %v728_v11, %v1314_v20 }
 0x1ed   : > { %v723_v10 = vpop.f32.mrf.mxu3 }
 0x1ee   : > { %v724_v12 = vadd.f32 %v723_v10, %v690_v9  ;;  %v737_v24 = vsel %vm736_vm1, %v732_v16, 0.0 }
 0x1ef   : > { %v720_v14 = vpop.f32.mrf.mxu1 }
 0x1f0   : > { %v721_v15 = vadd.f32 %v720_v14, %v685_v13  ;;  %v730_v17 = vadd.f32 %v724_v12, %v1340_v31 }
 0x1f2   : > { %v729_v18 = vadd.f32 %v721_v15, %v1348_v35  ;;  %v734_v25 = vmul.f32 %v730_v17, %v1312_v19  ;;  %v751_v19 = vstv %s750_s14  ;;  %s1061_s14 = sshra.s32 %s813_s30, 4  ;;  %s1062_s14 = int_to_ptr.hbm [resolvable:$true] %s1061_s14 }
 0x1f3   : > { %p1068_p0 = scmp.lt.s32.totalorder %s1062_s14, %s1496_s9 }
 0x1f4   : > { %v733_v21 = vmul.f32 %v729_v18, %v1333_v27  ;;  %v740_v32 = vsel %vm736_vm1, %v734_v25, 0.0 }
 0x1f5   : > { %v725_v23 = vpop.f32.mrf.mxu3 }
 0x1f6   : > { %v738_v38 = vsel %vm736_vm1, %v733_v21, 0.0  ;;  %v726_v28 = vadd.f32 %v725_v23, %v695_v22 }
 0x1f7   : > { %v739_v29 = vadd.f32 %v738_v38, %v737_v24 }
 0x1f8   : > { %v731_v30 = vadd.f32 %v726_v28, %v1343_v33 }
 0x1f9   : > { %v741_v31 = vadd.f32 %v740_v32, %v739_v29 }
 0x1fa   : > { %v735_v20 = vmul.f32 %v731_v30, %v1331_v26 }
 0x1fc   : > { %v742_v34 = vsel %vm736_vm1, %v735_v20, 0.0 }
 0x1fd   : > { %v743_v35 = vadd.f32 %v742_v34, %v741_v31 }
 0x1ff   : > { %v744_v36 = vrot.slane %v743_v35, 4 }
 0x201   : > { %v745_v27 = vadd.f32 %v744_v36, %v743_v35 }
 0x203   : > { %v746_v37 = vrot.slane %v745_v27, 2 }
 0x205   : > { %v747_v39 = vadd.f32 %v746_v37, %v745_v27 }
 0x207   : > { %v748_v40 = vrot.slane %v747_v39, 1 }
 0x209   : > { %v749_v41 = vadd.f32 %v748_v40, %v747_v39 }
 0x20b   : > { %v752_v42 = vadd.f32 %v751_v19, %v749_v41 }
 0x20d   : > { %v775_v33 = vand.u32 2147483647, %v752_v42  ;;  %v756_v43 = vsub.f32 0.0, %v752_v42  ;;  %754 = vst.msk [vmem:[%s363_s21] sm:$0x1] %vm753_vm2, %v752_v42  ;;  %v774_v2 = vmax.f32 %v752_v42, 0.0 }
 0x20e   : > { %s1063_s21 = scalar_lea.hbm %s1062_s14, 1 }
 0x20f   : > { %v776_v26 = vsub.f32 0.0, %v775_v33  ;;  %v758_v44 = vand.u32 2147483647, %v756_v43  ;;  %v757_v61 = vmax.f32 %v756_v43, 0.0  ;;  %p1064_p11 = scmp.ne.s32.totalorder %s1062_s14, %s1063_s21  ;;  %p1069_p1 = scmp.lt.s32.totalorder %s1067_s27, %s1063_s21 }
 0x211   : > { %v777_v45 = vmul.f32 1.442695, %v776_v26  ;;  %v759_v46 = vsub.f32 0.0, %v758_v44  ;;  %p1065_p12 = pnand %p1064_p11, %p1240_p5  ;;  %p1070_p2 = por %p1069_p1, %p1068_p0 }
 0x213   : > { %1039 = vpow2.f32 %v777_v45  ;;  %v760_v47 = vmul.f32 1.442695, %v759_v46  ;;  %p1066_p13 = pneg %p1065_p12 }
 0x215   : > { %1041 = vpow2.f32 %v760_v47  ;;  %p1071_p3 = pnand %p1070_p2, %p1066_p13 }
 0x219   : > { %v1040_v48 = vpop.eup %1039 }
 0x21a   : > { %v779_v49 = vadd.f32 1.0, %v1040_v48  ;;  %v782_v51 = vmul.f32 -0.5, %v1040_v48  ;;  %v785_v58 = vand.u32 2147483647, %v1040_v48 }
 0x21b   : > { %v1042_v50 = vpop.eup %1041 }
 0x21c   : > { %v762_v54 = vadd.f32 1.0, %v1042_v50  ;;  %1043 = vlog2.f32 %v779_v49  ;;  %v765_v55 = vmul.f32 -0.5, %v1042_v50  ;;  %v783_v57 = vadd.f32 1.0, %v782_v51 }
 0x21d   : > { %v768_v60 = vand.u32 2147483647, %v1042_v50  ;;  %vm786_vm3 = vcmp.lt.f32.partialorder %v785_v58, 0.0004427343 }
 0x21e   : > { %1045 = vlog2.f32 %v762_v54  ;;  %v766_v59 = vadd.f32 1.0, %v765_v55  ;;  %v784_v0 = vmul.f32 %v1040_v48, %v783_v57 }
 0x21f   : > { %vm1436_vm4 = vcmp.lt.f32.partialorder %v768_v60, 0.0004427343 }
 0x220   : > { %v767_v4 = vmul.f32 %v1042_v50, %v766_v59 }
 0x222   : > { %v1044_v53 = vpop.eup %1043 }
 0x223   : > { %v781_v63 = vmul.f32 0.6931472, %v1044_v53 }
 0x224   : > { %v1046_v1 = vpop.eup %1045 }
 0x225   : > { %v764_v3 = vmul.f32 0.6931472, %v1046_v1  ;;  %v787_v5 = vsel %vm786_vm3, %v784_v0, %v781_v63 }
 0x226   : > { %v788_v52 = vadd.f32 %v787_v5, %v774_v2 }
 0x227   : > { %v770_v7 = vsel %vm1436_vm4, %v767_v4, %v764_v3 }
 0x228   : > { %1074 = shalt.err (!%p1071_p3)
}
 0x229   : > { %990 = dma.vmem_to_hbm [thread:$0]  (%p1240_p5), %s811_s12, 16, %s813_s30, %s796_s13   ;;  %v771_v8 = vadd.f32 %v770_v7, %v757_v61  ;;  %v789_v10 = vmul.f32 %v788_v52, %v773_v56 }
 0x22a   : > { %s821_s21 = scalar_lea.hbm %s1497_s10, %s1223_s7  ;;  %s369_s22 = scalar_lea.vmem [#allocation5], %s1424_s19 }
 0x22b   : > { %v772_v9 = vmul.f32 %v771_v8, %v755_v62  ;;  %s823_s26 = sshll.u32 %s369_s22, 4  ;;  %s825_s27 = sshll.u32 %s821_s21, 4  ;;  %s824_s26 = int_to_ptr.vmem [resolvable:$true] %s823_s26  ;;  %s826_s27 = int_to_ptr.hbm [resolvable:$true] %s825_s27 }
 0x22c   : > { %s800_s12 = scalar_lea.sflag [#allocation6], %s1424_s19  ;;  %s1089_s30 = sshra.s32 %s826_s27, 4  ;;  %s1090_s30 = int_to_ptr.hbm [resolvable:$true] %s1089_s30 }
 0x22d   : > { %v790_v11 = vadd.f32 %v789_v10, %v772_v9  ;;  %s1091_s13 = scalar_lea.hbm %s1090_s30, 1  ;;  %s1095_s11 = scalar_lea.hbm %s1497_s10, 2 }
 0x22e   : > { %p1092_p4 = scmp.ne.s32.totalorder %s1090_s30, %s1091_s13  ;;  %p1096_p9 = scmp.lt.s32.totalorder %s1090_s30, %s1497_s10 }
 0x22f   : > { %v791_v12 = vsel %vm753_vm2, %v790_v11, 0.0  ;;  %p1097_p10 = scmp.lt.s32.totalorder %s1095_s11, %s1091_s13 }
 0x230   : > { %792 = vadd.xlane.f32.xlu0 %v791_v12  ;;  %p1093_p7 = pnand %p1092_p4, %p1240_p5 }
 0x231   : > { %p1098_p11 = por %p1097_p10, %p1096_p9 }
 0x232   : > { %p1094_p8 = pneg %p1093_p7 }
 0x234   : > { %p1099_p12 = pnand %p1098_p11, %p1094_p8 }
 0x2a3   : > { %v793_v13 = vpop.xlane.xlu0 %792 }
 0x2a4   : > { %794 = vst [vmem:[%s369_s22] sm:$0x1] %v793_v13 }
 0x2a5   : > { %1102 = shalt.err (!%p1099_p12)
}
 0x2a6   : > { %991 = dma.vmem_to_hbm [thread:$0]  (%p1240_p5), %s824_s26, 16, %s826_s27, %s800_s12  }
 0x2a7 PF: > { %p1001_p13 = scmp.ge.s32.totalorder %s1141_s18, 2  ;;  %s837_s19 = sand.u32 1, %s1129_s15  }
 0x2a8   : > { %s838_s21 = scalar_lea.sflag [#allocation4], %s837_s19 }
 0x2a9   : > { %p995_p0 = pnand %p1001_p13, %p1244_p6 }
 0x2ab   : > { %p996_p1 = pneg %p995_p0 }
 0x2ad   : > { %1120 = dma.done.wait (%p996_p1), %s838_s21, 16  }
 0x2ae   : > { %1122 = vsyncadd (%p996_p1), %s838_s21, 4294967280  ;;  %s847_s22 = scalar_lea.sflag [#allocation6], %s837_s19 }
 0x2af   : > { %1124 = dma.done.wait (%p996_p1), %s847_s22, 16  }
 0x2b0   : > { %1126 = vsyncadd (%p996_p1), %s847_s22, 4294967280  ;;  %p25_p5 = scmp.ge.s32.totalorder %s1227_s20, 4   ;;  %s1502_s15 = smov %s1133_s16 }
 0x2b1   : > { %s1503_s16 = smov %s1137_s17  ;;  %s1504_s17 = smov %s1238_s23 }
 0x2b2   : > { %s1505_s18 = smov %s1227_s20  ;;  %27 = sbr.rel (!%p25_p5) target bundleno = 7 (0x7), region = 111 }
 0x2b7   :  { %852 = vsyncpa [#allocation4], 1 }
 0x2b8   :  { %854 = vsyncpa [#allocation4 + $0x1], 1 }
 0x2b9   :  { %855 = vsyncpa [#allocation6], 1 }
 0x2ba   :  { %857 = vsyncpa [#allocation6 + $0x1], 1 }

</bundles_post_ra>
